<compile_context>
chip_gen: v5e
topology: v5e:2x2
jax: 0.10.0
libtpu: 0.0.40
codegen_flags: <defaults>
</compile_context>

<pallas_src>
import jax
import jax.numpy as jnp
from jax.experimental import pallas as pl
from jax.experimental.pallas import tpu as pltpu

BN_EPS = 1e-5
VMEM_LIMIT_BYTES = 32 * 1024 * 1024  # safe on v5e/v6e (128 MiB) and v7x (64 MiB)


def _make_conv_relu_stats_kernel(kh, kw, h_out, w_out, c_in, stride):
    hw = h_out * w_out

    def kernel(x_ref, w_ref, b_ref, y_ref, part_ref):
        # x_ref:    (Hp, Wp, C_in)          one spatially padded NHWC image
        # w_ref:    (kh*kw*C_in, C_out)     im2col-ordered weights (resident)
        # b_ref:    (1, C_out)              conv bias (resident)
        # y_ref:    (H_out*W_out, C_out)    ReLU(conv) output for this image
        # part_ref: (2, C_out)              per-image [sum, sum-of-squares]
        #
        # Build the im2col tile in VMEM (kh*kw shifted slices, lane-concat) and
        # contract all taps in a single MXU dot (K = kh*kw*C_in).
        pieces = []
        for i in range(kh):
            for j in range(kw):
                if stride == 1:
                    xs = x_ref[pl.ds(i, h_out), pl.ds(j, w_out), :]
                else:
                    # TODO(synk): for stride>1 / w_out not a multiple of 8 an
                    # einsum over the spatial dims avoids the relayout copies.
                    xs = x_ref[pl.ds(i, h_out, stride), pl.ds(j, w_out, stride), :]
                # (h_out, w_out, C_in) -> (h_out*w_out, C_in): collapses leading
                # dims only (minor dim unchanged, w_out multiple of 8).
                pieces.append(xs.reshape(hw, c_in))
        patch = jnp.concatenate(pieces, axis=-1)              # (hw, kh*kw*C_in)

        acc = jnp.dot(patch, w_ref[...], preferred_element_type=jnp.float32)
        y = jnp.maximum(acc + b_ref[...], 0.0)                # bias + ReLU fused
        y_ref[...] = y.astype(y_ref.dtype)                    # stored exactly once

        # Per-image partial statistics for the global (two-pass) BatchNorm,
        # written with a single (2, C_out) store from the resident y.
        part_ref[...] = jnp.concatenate(
            [jnp.sum(y, axis=0, keepdims=True),
             jnp.sum(y * y, axis=0, keepdims=True)],
            axis=0,
        )

    return kernel


def conv_layer_forward(x_nchw, conv_w, conv_b, bn_gamma, bn_beta, *, stride, padding):
    """ConvLayer.forward: conv -> relu -> batchnorm (training stats). NCHW in/out."""
    f32 = jnp.float32
    N, C_in, H, W = x_nchw.shape
    C_out, C_in_w, kh, kw = conv_w.shape
    assert C_in == C_in_w

    H_out = (H + 2 * padding - kh) // stride + 1
    W_out = (W + 2 * padding - kw) // stride + 1
    HW = H_out * W_out
    M = N * HW
    K = kh * kw * C_in

    # Layout plumbing (1x the input, no HBM im2col): NCHW -> padded NHWC.
    x_nhwc = jnp.transpose(x_nchw, (0, 2, 3, 1)).astype(f32)
    xp = jnp.pad(x_nhwc, ((0, 0), (padding, padding), (padding, padding), (0, 0)))
    Hp, Wp = H + 2 * padding, W + 2 * padding

    # (C_out, C_in, kh, kw) -> (kh, kw, C_in, C_out) -> (K, C_out), matching the
    # in-kernel im2col column order ((i*kw + j)*C_in + c).
    w_flat = jnp.transpose(conv_w.astype(f32), (2, 3, 1, 0)).reshape(K, C_out)
    b_row = conv_b.astype(f32).reshape(1, C_out)

    # ---- Pallas pass: conv + bias + ReLU + per-image BN partial sums ----------
    kernel = _make_conv_relu_stats_kernel(kh, kw, H_out, W_out, C_in, stride)
    flops = 2 * M * K * C_out + 4 * M * C_out
    bytes_acc = 4 * (xp.size + w_flat.size + b_row.size + M * C_out + N * 2 * C_out)

    y, partials = pl.pallas_call(
        kernel,
        out_shape=(
            jax.ShapeDtypeStruct((N, HW, C_out), f32),
            jax.ShapeDtypeStruct((N, 2, C_out), f32),
        ),
        grid_spec=pltpu.PrefetchScalarGridSpec(
            num_scalar_prefetch=0,
            grid=(N,),
            in_specs=[
                pl.BlockSpec((None, Hp, Wp, C_in), lambda n: (n, 0, 0, 0)),
                pl.BlockSpec((K, C_out), lambda n: (0, 0)),   # resident
                pl.BlockSpec((1, C_out), lambda n: (0, 0)),   # resident
            ],
            out_specs=[
                pl.BlockSpec((None, HW, C_out), lambda n: (n, 0, 0)),
                pl.BlockSpec((None, 2, C_out), lambda n: (n, 0, 0)),
            ],
        ),
        compiler_params=pltpu.CompilerParams(
            dimension_semantics=("parallel",),
            vmem_limit_bytes=VMEM_LIMIT_BYTES,
        ),
        cost_estimate=pl.CostEstimate(
            flops=flops, transcendentals=0, bytes_accessed=bytes_acc
        ),
    )(xp, w_flat, b_row)

    # ---- XLA epilogue: global BN stat fold + affine + slice-free transpose ----
    sums = jnp.sum(partials, axis=0)                        # (2, C_out)
    mean = sums[0] / M
    var = jnp.maximum(sums[1] / M - mean * mean, 0.0)       # biased var (training norm)
    inv_std = jax.lax.rsqrt(var + BN_EPS)
    scale = bn_gamma.astype(f32) * inv_std                  # (C_out,)
    shift = bn_beta.astype(f32) - mean * scale              # (C_out,)

    out_nhwc = y.reshape(N, H_out, W_out, C_out) * scale + shift
    return jnp.transpose(out_nhwc, (0, 3, 1, 2))            # back to NCHW


def _reference_forward(x_nchw, conv_w, conv_b, bn_gamma, bn_beta, *, stride, padding):
    """Pure-JAX reference (lax.conv) for a correctness check."""
    y = jax.lax.conv_general_dilated(
        x_nchw.astype(jnp.float32), conv_w.astype(jnp.float32),
        window_strides=(stride, stride),
        padding=[(padding, padding), (padding, padding)],
        dimension_numbers=("NCHW", "OIHW", "NCHW"),
    ) + conv_b.reshape(1, -1, 1, 1)
    y = jnp.maximum(y, 0.0)
    mean = jnp.mean(y, axis=(0, 2, 3), keepdims=True)
    var = jnp.mean((y - mean) ** 2, axis=(0, 2, 3), keepdims=True)
    y = (y - mean) * jax.lax.rsqrt(var + BN_EPS)
    return y * bn_gamma.reshape(1, -1, 1, 1) + bn_beta.reshape(1, -1, 1, 1)


if __name__ == "__main__":
    # ConvLayer(in_channels=4, out_channels=8, kernel_size=3, stride=1, padding=1)
    N, C_in, H, W = 2, 4, 16, 16
    C_out, ksize, stride, padding = 8, 3, 1, 1

    key = jax.random.PRNGKey(0)
    k_x, k_w, k_b, k_g, k_beta = jax.random.split(key, 5)

    x = jax.random.normal(k_x, (N, C_in, H, W), dtype=jnp.float32)
    conv_w = jax.random.normal(k_w, (C_out, C_in, ksize, ksize), dtype=jnp.float32) * 0.1
    conv_b = jax.random.normal(k_b, (C_out,), dtype=jnp.float32) * 0.1
    bn_gamma = 1.0 + 0.1 * jax.random.normal(k_g, (C_out,), dtype=jnp.float32)
    bn_beta = 0.1 * jax.random.normal(k_beta, (C_out,), dtype=jnp.float32)

    out = conv_layer_forward(
        x, conv_w, conv_b, bn_gamma, bn_beta, stride=stride, padding=padding
    )
    out = jax.block_until_ready(out)

    ref = _reference_forward(
        x, conv_w, conv_b, bn_gamma, bn_beta, stride=stride, padding=padding
    )
    assert out.shape == (N, C_out, H, W)
    assert jnp.allclose(out, ref, atol=1e-4, rtol=1e-4), "mismatch vs reference"

    print("KERNEL_OK")
</pallas_src>

<mosaic_0001>
module attributes {stable_mosaic.version = 11 : i64} {
  func.func @kernel(%arg0: i32, %arg1: memref<1x18x18x4xf32, #tpu.memory_space<vmem>>, %arg2: memref<36x8xf32, #tpu.memory_space<vmem>>, %arg3: memref<1x8xf32, #tpu.memory_space<vmem>>, %arg4: memref<1x256x8xf32, #tpu.memory_space<vmem>>, %arg5: memref<1x2x8xf32, #tpu.memory_space<vmem>>) attributes {dimension_semantics = [#tpu.dimension_semantics<parallel>], iteration_bounds = array<i64: 2>, scalar_prefetch = 0 : i64, scratch_operands = 0 : i64, tpu.core_type = #tpu.core_type<tc>, window_params = [{transform_indices = @transform_0, window_bounds = array<i64: 1, 18, 18, 4>}, {pipeline_mode = #tpu.pipeline_mode<synchronous>, transform_indices = @transform_1, window_bounds = array<i64: 36, 8>}, {pipeline_mode = #tpu.pipeline_mode<synchronous>, transform_indices = @transform_2, window_bounds = array<i64: 1, 8>}, {transform_indices = @transform_3, window_bounds = array<i64: 1, 256, 8>}, {transform_indices = @transform_4, window_bounds = array<i64: 1, 2, 8>}]} {
    %c0 = arith.constant 0 : index
    %c0_0 = arith.constant 0 : index
    %c0_1 = arith.constant 0 : index
    %c0_2 = arith.constant 0 : index
    %0 = vector.load %arg1[%c0, %c0_0, %c0_1, %c0_2] : memref<1x18x18x4xf32, #tpu.memory_space<vmem>>, vector<1x16x16x4xf32>
    %1 = vector.shape_cast %0 : vector<1x16x16x4xf32> to vector<16x16x4xf32>
    %2 = vector.shape_cast %1 : vector<16x16x4xf32> to vector<256x4xf32>
    %c0_3 = arith.constant 0 : index
    %c0_4 = arith.constant 0 : index
    %c1 = arith.constant 1 : index
    %c0_5 = arith.constant 0 : index
    %3 = vector.load %arg1[%c0_3, %c0_4, %c1, %c0_5] : memref<1x18x18x4xf32, #tpu.memory_space<vmem>>, vector<1x16x16x4xf32>
    %4 = vector.shape_cast %3 : vector<1x16x16x4xf32> to vector<16x16x4xf32>
    %5 = vector.shape_cast %4 : vector<16x16x4xf32> to vector<256x4xf32>
    %c0_6 = arith.constant 0 : index
    %c0_7 = arith.constant 0 : index
    %c2 = arith.constant 2 : index
    %c0_8 = arith.constant 0 : index
    %6 = vector.load %arg1[%c0_6, %c0_7, %c2, %c0_8] : memref<1x18x18x4xf32, #tpu.memory_space<vmem>>, vector<1x16x16x4xf32>
    %7 = vector.shape_cast %6 : vector<1x16x16x4xf32> to vector<16x16x4xf32>
    %8 = vector.shape_cast %7 : vector<16x16x4xf32> to vector<256x4xf32>
    %c0_9 = arith.constant 0 : index
    %c1_10 = arith.constant 1 : index
    %c0_11 = arith.constant 0 : index
    %c0_12 = arith.constant 0 : index
    %9 = vector.load %arg1[%c0_9, %c1_10, %c0_11, %c0_12] : memref<1x18x18x4xf32, #tpu.memory_space<vmem>>, vector<1x16x16x4xf32>
    %10 = vector.shape_cast %9 : vector<1x16x16x4xf32> to vector<16x16x4xf32>
    %11 = vector.shape_cast %10 : vector<16x16x4xf32> to vector<256x4xf32>
    %c0_13 = arith.constant 0 : index
    %c1_14 = arith.constant 1 : index
    %c1_15 = arith.constant 1 : index
    %c0_16 = arith.constant 0 : index
    %12 = vector.load %arg1[%c0_13, %c1_14, %c1_15, %c0_16] : memref<1x18x18x4xf32, #tpu.memory_space<vmem>>, vector<1x16x16x4xf32>
    %13 = vector.shape_cast %12 : vector<1x16x16x4xf32> to vector<16x16x4xf32>
    %14 = vector.shape_cast %13 : vector<16x16x4xf32> to vector<256x4xf32>
    %c0_17 = arith.constant 0 : index
    %c1_18 = arith.constant 1 : index
    %c2_19 = arith.constant 2 : index
    %c0_20 = arith.constant 0 : index
    %15 = vector.load %arg1[%c0_17, %c1_18, %c2_19, %c0_20] : memref<1x18x18x4xf32, #tpu.memory_space<vmem>>, vector<1x16x16x4xf32>
    %16 = vector.shape_cast %15 : vector<1x16x16x4xf32> to vector<16x16x4xf32>
    %17 = vector.shape_cast %16 : vector<16x16x4xf32> to vector<256x4xf32>
    %c0_21 = arith.constant 0 : index
    %c2_22 = arith.constant 2 : index
    %c0_23 = arith.constant 0 : index
    %c0_24 = arith.constant 0 : index
    %18 = vector.load %arg1[%c0_21, %c2_22, %c0_23, %c0_24] : memref<1x18x18x4xf32, #tpu.memory_space<vmem>>, vector<1x16x16x4xf32>
    %19 = vector.shape_cast %18 : vector<1x16x16x4xf32> to vector<16x16x4xf32>
    %20 = vector.shape_cast %19 : vector<16x16x4xf32> to vector<256x4xf32>
    %c0_25 = arith.constant 0 : index
    %c2_26 = arith.constant 2 : index
    %c1_27 = arith.constant 1 : index
    %c0_28 = arith.constant 0 : index
    %21 = vector.load %arg1[%c0_25, %c2_26, %c1_27, %c0_28] : memref<1x18x18x4xf32, #tpu.memory_space<vmem>>, vector<1x16x16x4xf32>
    %22 = vector.shape_cast %21 : vector<1x16x16x4xf32> to vector<16x16x4xf32>
    %23 = vector.shape_cast %22 : vector<16x16x4xf32> to vector<256x4xf32>
    %c0_29 = arith.constant 0 : index
    %c2_30 = arith.constant 2 : index
    %c2_31 = arith.constant 2 : index
    %c0_32 = arith.constant 0 : index
    %24 = vector.load %arg1[%c0_29, %c2_30, %c2_31, %c0_32] : memref<1x18x18x4xf32, #tpu.memory_space<vmem>>, vector<1x16x16x4xf32>
    %25 = vector.shape_cast %24 : vector<1x16x16x4xf32> to vector<16x16x4xf32>
    %26 = vector.shape_cast %25 : vector<16x16x4xf32> to vector<256x4xf32>
    %27 = tpu.concatenate %2, %5, %8, %11, %14, %17, %20, %23, %26 in 1 : vector<256x4xf32>, vector<256x4xf32>, vector<256x4xf32>, vector<256x4xf32>, vector<256x4xf32>, vector<256x4xf32>, vector<256x4xf32>, vector<256x4xf32>, vector<256x4xf32> -> vector<256x36xf32>
    %c0_33 = arith.constant 0 : index
    %c0_34 = arith.constant 0 : index
    %28 = vector.load %arg2[%c0_33, %c0_34] : memref<36x8xf32, #tpu.memory_space<vmem>>, vector<36x8xf32>
    %cst = arith.constant dense<0.000000e+00> : vector<256x8xf32>
    %29 = tpu.matmul %27, %28, %cst {dimension_numbers = #tpu.dot_dimension_numbers<[1], [0], [0], [1], [0, 0, 1, 1], [], []>} : vector<256x36xf32>, vector<36x8xf32>, vector<256x8xf32> -> vector<256x8xf32>
    %c0_35 = arith.constant 0 : index
    %c0_36 = arith.constant 0 : index
    %30 = vector.load %arg3[%c0_35, %c0_36] : memref<1x8xf32, #tpu.memory_space<vmem>>, vector<1x8xf32>
    %31 = vector.broadcast %30 : vector<1x8xf32> to vector<256x8xf32>
    %32 = arith.addf %29, %31 : vector<256x8xf32>
    %cst_37 = arith.constant 0.000000e+00 : f32
    %33 = vector.broadcast %cst_37 : f32 to vector<256x8xf32>
    %34 = arith.maximumf %32, %33 : vector<256x8xf32>
    %c0_38 = arith.constant 0 : index
    %c0_39 = arith.constant 0 : index
    %c0_40 = arith.constant 0 : index
    %35 = vector.load %arg4[%c0_38, %c0_39, %c0_40] : memref<1x256x8xf32, #tpu.memory_space<vmem>>, vector<1x256x8xf32>
    %36 = vector.shape_cast %35 : vector<1x256x8xf32> to vector<256x8xf32>
    %37 = vector.shape_cast %34 : vector<256x8xf32> to vector<1x256x8xf32>
    tpu.vector_store %arg4[%c0_38, %c0_39, %c0_40], %37 {strides = array<i32>} : memref<1x256x8xf32, #tpu.memory_space<vmem>>, vector<1x256x8xf32>,
    %cst_41 = arith.constant dense<0.000000e+00> : vector<8xf32>
    %38 = vector.multi_reduction <add>, %34, %cst_41 [0] : vector<256x8xf32> to vector<8xf32>
    %39 = vector.shape_cast %38 : vector<8xf32> to vector<1x8xf32>
    %40 = arith.mulf %34, %34 : vector<256x8xf32>
    %cst_42 = arith.constant dense<0.000000e+00> : vector<8xf32>
    %41 = vector.multi_reduction <add>, %40, %cst_42 [0] : vector<256x8xf32> to vector<8xf32>
    %42 = vector.shape_cast %41 : vector<8xf32> to vector<1x8xf32>
    %43 = tpu.concatenate %39, %42 in 0 : vector<1x8xf32>, vector<1x8xf32> -> vector<2x8xf32>
    %c0_43 = arith.constant 0 : index
    %c0_44 = arith.constant 0 : index
    %c0_45 = arith.constant 0 : index
    %44 = vector.load %arg5[%c0_43, %c0_44, %c0_45] : memref<1x2x8xf32, #tpu.memory_space<vmem>>, vector<1x2x8xf32>
    %45 = vector.shape_cast %44 : vector<1x2x8xf32> to vector<2x8xf32>
    %46 = vector.shape_cast %43 : vector<2x8xf32> to vector<1x2x8xf32>
    tpu.vector_store %arg5[%c0_43, %c0_44, %c0_45], %46 {strides = array<i32>} : memref<1x2x8xf32, #tpu.memory_space<vmem>>, vector<1x2x8xf32>,
    return
  }
  func.func @transform_0(%arg0: i32) -> (i32, i32, i32, i32) {
    %c0_i32 = arith.constant 0 : i32
    %c0_i32_0 = arith.constant 0 : i32
    %c0_i32_1 = arith.constant 0 : i32
    %c0_i32_2 = arith.constant 0 : i32
    return %arg0, %c0_i32, %c0_i32_0, %c0_i32_1 : i32, i32, i32, i32
  }
  func.func @transform_1(%arg0: i32) -> (i32, i32) {
    %c0_i32 = arith.constant 0 : i32
    %c0_i32_0 = arith.constant 0 : i32
    %c0_i32_1 = arith.constant 0 : i32
    return %c0_i32, %c0_i32_0 : i32, i32
  }
  func.func @transform_2(%arg0: i32) -> (i32, i32) {
    %c0_i32 = arith.constant 0 : i32
    %c0_i32_0 = arith.constant 0 : i32
    %c0_i32_1 = arith.constant 0 : i32
    return %c0_i32, %c0_i32_0 : i32, i32
  }
  func.func @transform_3(%arg0: i32) -> (i32, i32, i32) {
    %c0_i32 = arith.constant 0 : i32
    %c0_i32_0 = arith.constant 0 : i32
    %c0_i32_1 = arith.constant 0 : i32
    return %arg0, %c0_i32, %c0_i32_0 : i32, i32, i32
  }
  func.func @transform_4(%arg0: i32) -> (i32, i32, i32) {
    %c0_i32 = arith.constant 0 : i32
    %c0_i32_0 = arith.constant 0 : i32
    %c0_i32_1 = arith.constant 0 : i32
    return %arg0, %c0_i32, %c0_i32_0 : i32, i32, i32
  }
}

</mosaic_0001>

<bundles_post_ra>
// kernel: tpu_custom_call.1
= control target key start
LH: loop header
LB: loop body
LE: loop exit
PB: predicated region body
PF: predicated region fallthrough
CT: control target
= control target key end

     0   :  { %10 = vsyncpa [#allocation3], 0  ;;  %s4719_s0 = inlined_call_operand.vmem [shape: f32[2,18,18,4], index: 0, kind: input, shape index: {}]   ;;  %s4720_s1 = inlined_call_operand.vmem [shape: f32[36,8], index: 1, kind: input, shape index: {}]   ;;  %s4721_s2 = inlined_call_operand.vmem [shape: f32[1,8], index: 2, kind: input, shape index: {}]   ;;  %s4722_s3 = inlined_call_operand.vmem [shape: f32[2,256,8], index: 3, kind: output, shape index: {0}]   ;;  %s4723_s4 = inlined_call_operand.hbm [shape: f32[2,2,8], index: 4, kind: output, shape index: {1}]  }
   0x1   :  { %12 = vsyncpa [#allocation3 + $0x1], 0  ;;  %s2764_s15 = smov 0   ;;  %s2766_s16 = smov 0  }
   0x2   :  { %s2768_s17 = smov 0   ;;  %s2770_s18 = smov 0  }
   0x3 LB: > { %s2785_s19 = sadd.s32 4294967295, %s2729_s18   ;;  %s2356_s20 = sadd.s32 4294967294, %s2729_s18   ;;  %s2729_s18 = sphi %s2770_s18, %s4959_s18   ;;  %s2725_s17 = sphi %s2768_s17, %s4958_s17   ;;  %s2721_s16 = sphi %s2766_s16, %s4957_s16   ;;  %s2717_s15 = sphi %s2764_s15, %s4956_s15  }
   0x4   : > { %s2789_s21 = sadd.s32 1, %s2729_s18   ;;  %s119_s22 = sadd.s32 1, %s2725_s17 }
   0x5   : > { %s116_s23 = ssub.s32 %s2729_s18, %s2789_s21  ;;  %p129_p0 = scmp.ne.s32.totalorder %s2725_s17, %s2721_s16 }
   0x6   : > { %p117_p1 = scmp.eq.s32.totalorder %s116_s23, 0  ;;  %p130_p2 = scmp.eq.s32.totalorder %s2785_s19, 1 }
   0x7   : > { %p135_p3 = scmp.ne.s32.totalorder %s2721_s16, %s2717_s15  ;;  %p136_p4 = scmp.eq.s32.totalorder %s2356_s20, 1 }
   0x8   : > { %s2800_s24 = scalar_select %p117_p1, %s2725_s17, %s119_s22  }
   0x9   : > { %p2802_p5 = por %p130_p2, %p129_p0  ;;  %p2806_p6 = por %p136_p4, %p135_p3 }
   0xa   : > { %p2359_p7 = scmp.ge.s32.totalorder %s2729_s18, 1  ;;  %p168_p8 = scmp.lt.s32.totalorder %s2729_s18, 3 }
   0xc   : > { %p169_p9 = pnand %p2359_p7, %p168_p8 }
   0xe   : > { %172 = sbr.rel (%p169_p9) target bundleno = 981 (0x3d5), region = 32 }
  0x13   : > { %p199_p10 = scmp.lt.s32.totalorder %s2785_s19, 1  ;;  %s2731_s6 = smov 4   ;;  %vm1523_vm0 = vcmask 31744   ;;  %vm1556_vm1 = vcmask 64512   ;;  %vm1589_vm2 = vcmask 97280   ;;  %vm1622_vm3 = vcmask 130048  }
  0x14   : > { %s2732_s7 = smov 8   ;;  %s2733_s8 = smov 12   ;;  %vm1655_vm4 = vcmask 162816   ;;  %vm1893_vm5 = vcmask 1043456   ;;  %vm1688_vm6 = vcmask 195584   ;;  %vm1721_vm7 = vcmask 228352  }
  0x15   : > { %s2814_s27 = scalar_select %p199_p10, %s2785_s19, 1  ;;  %vm1754_vm8 = vcmask 261120   ;;  %vm1796_vm9 = vcmask 293888   ;;  %vm2244_vm10 = vcmask 1040384   ;;  %vm2246_vm11 = vcmask 58368  }
  0x16   : > { %s2734_s9 = smov 16   ;;  %s2735_s10 = smov 20  }
  0x17   : > { %s2609_s28 = smul.u32 432, %s2814_s27  ;;  %s2736_s11 = smov 24  }
  0x18   : > { %s2737_s12 = smov 32   ;;  %s2738_s13 = smov 28  }
  0x19   : > { %s2820_s5 = scalar_lea.vmem %s4719_s0, %s2609_s28  ;;  %s2593_s20 = sshll.u32 %s2814_s27, 8 }
  0x1a   : > { %v2823_v0 = vld [vmem:[%s2820_s5 + $0x31] sm:$0xff]  ;;  %v2826_v1 = vld [vmem:[%s2820_s5 + $0x19] sm:$0xff]  ;;  %v241_v2 = vld [vmem:[%s2820_s5 + $0x1] sm:$0xff]  ;;  %s4351_s28 = scalar_lea.vmem %s4722_s3, %s2593_s20  ;;  %s196_s27 = sand.u32 1, %s2721_s16  }
  0x1b   : > { %539 = vrot.lane.b32.xlu2 %v2823_v0, %s2731_s6  ;;  %535 = vrot.lane.b32.xlu1 %v2826_v1, %s2731_s6  ;;  %v2835_v3 = vld [vmem:[%s2820_s5 + $0x39] sm:$0xff]  ;;  %v2838_v4 = vld [vmem:[%s2820_s5 + $0x21] sm:$0xff]  ;;  %s2687_s20 = scalar_lea.hbm %s4723_s4, 4 }
  0x1c   : > { %531 = vrot.lane.b32.xlu0 %v241_v2, %s2731_s6  ;;  %v242_v5 = vld [vmem:[%s2820_s5 + $0x9] sm:$0xff]  ;;  %v2847_v6 = vld [vmem:[%s2820_s5 + $0x61] sm:$0xff]  ;;  %v2850_v7 = vld [vmem:[%s2820_s5 + $0x51] sm:$0xff] }
  0x1d   : > { %v2853_v8 = vld [vmem:[%s2820_s5 + $0x49] sm:$0xff]  ;;  %v2862_v9 = vld [vmem:[%s2820_s5 + $0x81] sm:$0xff]  ;;  %v2865_v10 = vld [vmem:[%s2820_s5 + $0x79] sm:$0xff] }
  0x1e   : > { %v2868_v11 = vld [vmem:[%s2820_s5 + $0x69] sm:$0xff]  ;;  %v2880_v13 = vld [vmem:[%s2820_s5 + $0x99] sm:$0xff]  ;;  %v2883_v14 = vld [vmem:[%s2820_s5 + $0x91] sm:$0xff] }
  0x1f   : > { %v2877_v12 = vld [vmem:[%s2820_s5 + $0xa9] sm:$0xff]  ;;  %v2895_v16 = vld [vmem:[%s2820_s5 + $0xc1] sm:$0xff]  ;;  %v2898_v17 = vld [vmem:[%s2820_s5 + $0xb1] sm:$0xff] }
  0x20   : > { %v2892_v15 = vld [vmem:[%s2820_s5 + $0xc9] sm:$0xff]  ;;  %v2907_v18 = vld [vmem:[%s2820_s5 + $0xf1] sm:$0xff]  ;;  %v2910_v19 = vld [vmem:[%s2820_s5 + $0xe1] sm:$0xff] }
  0x21   : > { %v2913_v20 = vld [vmem:[%s2820_s5 + $0xd9] sm:$0xff]  ;;  %v2922_v21 = vld [vmem:[%s2820_s5 + $0x111] sm:$0xff]  ;;  %v2925_v22 = vld [vmem:[%s2820_s5 + $0x109] sm:$0xff] }
  0x22   : > { %v2928_v23 = vld [vmem:[%s2820_s5 + $0xf9] sm:$0xff]  ;;  %v2940_v25 = vld [vmem:[%s2820_s5 + $0x129] sm:$0xff]  ;;  %v2943_v26 = vld [vmem:[%s2820_s5 + $0x121] sm:$0xff] }
  0x23   : > { %541 = vrot.lane.b32.xlu2 %v2835_v3, %s2731_s6  ;;  %537 = vrot.lane.b32.xlu1 %v2838_v4, %s2731_s6  ;;  %v2937_v24 = vld [vmem:[%s2820_s5 + $0x139] sm:$0xff]  ;;  %v2955_v28 = vld [vmem:[%s2820_s5 + $0x151] sm:$0xff] }
  0x24   : > { %533 = vrot.lane.b32.xlu0 %v242_v5, %s2731_s6  ;;  %v2952_v27 = vld [vmem:[%s2820_s5 + $0x159] sm:$0xff]  ;;  %v2958_v29 = vld [vmem:[%s2820_s5 + $0x141] sm:$0xff]  ;;  %v2968_v31 = vld [vmem:[%s2820_s5 + $0x171] sm:$0xff] }
  0x25   : > { %v273_v30 = vld [vmem:[%s2820_s5 + $0x2] sm:$0xff]  ;;  %v2982_v34 = vld [vmem:[%s2820_s5 + $0x1a] sm:$0xff]  ;;  %v274_v35 = vld [vmem:[%s2820_s5 + $0xa] sm:$0xff] }
  0x26   : > { %v2971_v32 = vld [vmem:[%s2820_s5 + $0x169] sm:$0xff]  ;;  %v2996_v38 = vld [vmem:[%s2820_s5 + $0x3a] sm:$0xff]  ;;  %v2999_v39 = vld [vmem:[%s2820_s5 + $0x32] sm:$0xff] }
  0x27   : > { %v2979_v33 = vld [vmem:[%s2820_s5 + $0x22] sm:$0xff]  ;;  %v2993_v37 = vld [vmem:[%s2820_s5 + $0x4a] sm:$0xff]  ;;  %v3016_v43 = vld [vmem:[%s2820_s5 + $0x52] sm:$0xff] }
  0x28   : > { %v3010_v41 = vld [vmem:[%s2820_s5 + $0x6a] sm:$0xff]  ;;  %v3013_v42 = vld [vmem:[%s2820_s5 + $0x62] sm:$0xff]  ;;  %v3027_v45 = vld [vmem:[%s2820_s5 + $0x92] sm:$0xff] }
  0x29   : > { %v3030_v46 = vld [vmem:[%s2820_s5 + $0x82] sm:$0xff]  ;;  %v3033_v47 = vld [vmem:[%s2820_s5 + $0x7a] sm:$0xff]  ;;  %v3048_v51 = vld [vmem:[%s2820_s5 + $0xb2] sm:$0xff] }
  0x2a   : > { %v3051_v52 = vld [vmem:[%s2820_s5 + $0xaa] sm:$0xff]  ;;  %v3054_v53 = vld [vmem:[%s2820_s5 + $0x9a] sm:$0xff]  ;;  %v3075_v59 = vld [vmem:[%s2820_s5 + $0xc2] sm:$0xff] }
  0x2b   : > { %547 = vrot.lane.b32.xlu2 %v2847_v6, %s2731_s6  ;;  %545 = vrot.lane.b32.xlu1 %v2850_v7, %s2731_s6  ;;  %v3069_v57 = vld [vmem:[%s2820_s5 + $0xda] sm:$0xff]  ;;  %v3072_v58 = vld [vmem:[%s2820_s5 + $0xca] sm:$0xff] }
  0x2c   : > { %543 = vrot.lane.b32.xlu0 %v2853_v8, %s2731_s6  ;;  %v3090_v63 = vld [vmem:[%s2820_s5 + $0xfa] sm:$0xff]  ;;  %v3093_v2 = vld [vmem:[%s2820_s5 + $0xf2] sm:$0xff]  ;;  %v3096_v5 = vld [vmem:[%s2820_s5 + $0xe2] sm:$0xff] }
  0x33   : > { %553 = vrot.lane.b32.xlu2 %v2862_v9, %s2731_s6  ;;  %551 = vrot.lane.b32.xlu1 %v2865_v10, %s2731_s6 }
  0x34   : > { %549 = vrot.lane.b32.xlu0 %v2868_v11, %s2731_s6 }
  0x3b   : > { %559 = vrot.lane.b32.xlu2 %v2877_v12, %s2731_s6  ;;  %557 = vrot.lane.b32.xlu1 %v2880_v13, %s2731_s6 }
  0x3c   : > { %555 = vrot.lane.b32.xlu0 %v2883_v14, %s2731_s6 }
  0x43   : > { %565 = vrot.lane.b32.xlu2 %v2892_v15, %s2731_s6  ;;  %563 = vrot.lane.b32.xlu1 %v2895_v16, %s2731_s6 }
  0x44   : > { %561 = vrot.lane.b32.xlu0 %v2898_v17, %s2731_s6 }
  0x4b   : > { %571 = vrot.lane.b32.xlu2 %v2907_v18, %s2731_s6  ;;  %569 = vrot.lane.b32.xlu1 %v2910_v19, %s2731_s6 }
  0x4c   : > { %567 = vrot.lane.b32.xlu0 %v2913_v20, %s2731_s6 }
  0x53   : > { %577 = vrot.lane.b32.xlu2 %v2922_v21, %s2731_s6  ;;  %575 = vrot.lane.b32.xlu1 %v2925_v22, %s2731_s6 }
  0x54   : > { %573 = vrot.lane.b32.xlu0 %v2928_v23, %s2731_s6 }
  0x5b   : > { %583 = vrot.lane.b32.xlu2 %v2937_v24, %s2731_s6  ;;  %581 = vrot.lane.b32.xlu1 %v2940_v25, %s2731_s6 }
  0x5c   : > { %579 = vrot.lane.b32.xlu0 %v2943_v26, %s2731_s6 }
  0x63   : > { %589 = vrot.lane.b32.xlu2 %v2952_v27, %s2731_s6  ;;  %587 = vrot.lane.b32.xlu1 %v2955_v28, %s2731_s6 }
  0x64   : > { %585 = vrot.lane.b32.xlu0 %v2958_v29, %s2731_s6 }
  0x6b   : > { %659 = vrot.lane.b32.xlu2 %v273_v30, %s2732_s7  ;;  %593 = vrot.lane.b32.xlu1 %v2968_v31, %s2731_s6 }
  0x6c   : > { %591 = vrot.lane.b32.xlu0 %v2971_v32, %s2731_s6 }
  0x73   : > { %665 = vrot.lane.b32.xlu2 %v2979_v33, %s2732_s7  ;;  %663 = vrot.lane.b32.xlu1 %v2982_v34, %s2732_s7 }
  0x74   : > { %661 = vrot.lane.b32.xlu0 %v274_v35, %s2732_s7 }
  0x75   : > { %v2990_v36 = vpop.permute.xlu2 %539 }
  0x76   : > { %4760 = vst [vmem:[#allocation5_spill] sm:$0xff] %v2990_v36 }
  0x7b   : > { %671 = vrot.lane.b32.xlu2 %v2993_v37, %s2732_s7  ;;  %669 = vrot.lane.b32.xlu1 %v2996_v38, %s2732_s7 }
  0x7c   : > { %667 = vrot.lane.b32.xlu0 %v2999_v39, %s2732_s7 }
  0x7d   : > { %v3007_v40 = vpop.permute.xlu2 %541 }
  0x7e   : > { %4761 = vst [vmem:[#allocation6_spill] sm:$0xff] %v3007_v40  ;;  %v3117_v40 = vld [vmem:[%s2820_s5 + $0x10a] sm:$0xff] }
  0x83   : > { %677 = vrot.lane.b32.xlu2 %v3010_v41, %s2732_s7  ;;  %675 = vrot.lane.b32.xlu1 %v3013_v42, %s2732_s7 }
  0x84   : > { %673 = vrot.lane.b32.xlu0 %v3016_v43, %s2732_s7 }
  0x85   : > { %v3024_v44 = vpop.permute.xlu2 %547 }
  0x86   : > { %4762 = vst [vmem:[#allocation7_spill] sm:$0xff] %v3024_v44 }
  0x8b   : > { %683 = vrot.lane.b32.xlu2 %v3027_v45, %s2732_s7  ;;  %681 = vrot.lane.b32.xlu1 %v3030_v46, %s2732_s7 }
  0x8c   : > { %679 = vrot.lane.b32.xlu0 %v3033_v47, %s2732_s7 }
  0x8d   : > { %v3041_v48 = vpop.permute.xlu2 %553  ;;  %v3043_v49 = vpop.permute.xlu1 %535 }
  0x8e   : > { %4763 = vst [vmem:[#allocation8_spill] sm:$0xff] %v3041_v48  ;;  %v3045_v50 = vpop.permute.xlu0 %531  ;;  %v3114_v48 = vld [vmem:[%s2820_s5 + $0x112] sm:$0xff] }
  0x8f   : > { %4764 = vst [vmem:[#allocation9_spill] sm:$0xff] %v3043_v49  ;;  %v3159_v49 = vld [vmem:[%s2820_s5 + $0x152] sm:$0xff] }
  0x90   : > { %4765 = vst [vmem:[#allocation10_spill] sm:$0xff] %v3045_v50  ;;  %v3132_v50 = vld [vmem:[%s2820_s5 + $0x142] sm:$0xff] }
  0x91   : > { %4778 = vst [vmem:[#allocation23_spill] sm:$0xff] %v3132_v50 }
  0x92   : > { %4784 = vst [vmem:[#allocation29_spill] sm:$0xff] %v3159_v49 }
  0x93   : > { %689 = vrot.lane.b32.xlu2 %v3048_v51, %s2732_s7  ;;  %687 = vrot.lane.b32.xlu1 %v3051_v52, %s2732_s7 }
  0x94   : > { %685 = vrot.lane.b32.xlu0 %v3054_v53, %s2732_s7 }
  0x95   : > { %v3062_v54 = vpop.permute.xlu2 %559  ;;  %v3064_v55 = vpop.permute.xlu1 %537 }
  0x96   : > { %4766 = vst [vmem:[#allocation11_spill] sm:$0xff] %v3062_v54  ;;  %v3066_v56 = vpop.permute.xlu0 %533  ;;  %v3153_v54 = vld [vmem:[%s2820_s5 + $0x16a] sm:$0xff] }
  0x97   : > { %4767 = vst [vmem:[#allocation12_spill] sm:$0xff] %v3064_v55 }
  0x98   : > { %4768 = vst [vmem:[#allocation13_spill] sm:$0xff] %v3066_v56 }
  0x99   : > { %4782 = vst [vmem:[#allocation27_spill] sm:$0xff] %v3153_v54 }
  0x9b   : > { %695 = vrot.lane.b32.xlu2 %v3069_v57, %s2732_s7  ;;  %693 = vrot.lane.b32.xlu1 %v3072_v58, %s2732_s7 }
  0x9c   : > { %691 = vrot.lane.b32.xlu0 %v3075_v59, %s2732_s7 }
  0x9d   : > { %v3083_v60 = vpop.permute.xlu2 %565  ;;  %v3085_v61 = vpop.permute.xlu1 %545 }
  0x9e   : > { %4769 = vst [vmem:[#allocation14_spill] sm:$0xff] %v3083_v60  ;;  %v3087_v62 = vpop.permute.xlu0 %543  ;;  %v3138_v60 = vld [vmem:[%s2820_s5 + $0x12a] sm:$0xff] }
  0x9f   : > { %4770 = vst [vmem:[#allocation15_spill] sm:$0xff] %v3085_v61 }
  0xa0   : > { %4771 = vst [vmem:[#allocation16_spill] sm:$0xff] %v3087_v62  ;;  %v3111_v62 = vld [vmem:[%s2820_s5 + $0x122] sm:$0xff] }
  0xa3   : > { %701 = vrot.lane.b32.xlu2 %v3090_v63, %s2732_s7  ;;  %699 = vrot.lane.b32.xlu1 %v3093_v2, %s2732_s7 }
  0xa4   : > { %697 = vrot.lane.b32.xlu0 %v3096_v5, %s2732_s7 }
  0xa5   : > { %v3104_v30 = vpop.permute.xlu2 %571  ;;  %v3106_v35 = vpop.permute.xlu1 %551 }
  0xa6   : > { %4772 = vst [vmem:[#allocation17_spill] sm:$0xff] %v3104_v30  ;;  %v3108_v61 = vpop.permute.xlu0 %549  ;;  %v3135_v30 = vld [vmem:[%s2820_s5 + $0x13a] sm:$0xff] }
  0xa7   : > { %4773 = vst [vmem:[#allocation18_spill] sm:$0xff] %v3106_v35  ;;  %v3156_v35 = vld [vmem:[%s2820_s5 + $0x15a] sm:$0xff] }
  0xa8   : > { %4774 = vst [vmem:[#allocation19_spill] sm:$0xff] %v3108_v61 }
  0xa9   : > { %4783 = vst [vmem:[#allocation28_spill] sm:$0xff] %v3156_v35 }
  0xab   : > { %707 = vrot.lane.b32.xlu2 %v3111_v62, %s2732_s7  ;;  %705 = vrot.lane.b32.xlu1 %v3114_v48, %s2732_s7 }
  0xac   : > { %703 = vrot.lane.b32.xlu0 %v3117_v40, %s2732_s7 }
  0xad   : > { %v3125_v36 = vpop.permute.xlu2 %577  ;;  %v3127_v44 = vpop.permute.xlu1 %557 }
  0xae   : > { %4775 = vst [vmem:[#allocation20_spill] sm:$0xff] %v3125_v36  ;;  %v3129_v56 = vpop.permute.xlu0 %555 }
  0xaf   : > { %4776 = vst [vmem:[#allocation21_spill] sm:$0xff] %v3127_v44 }
  0xb0   : > { %4777 = vst [vmem:[#allocation22_spill] sm:$0xff] %v3129_v56 }
  0xb3   : > { %713 = vrot.lane.b32.xlu2 %v3132_v50, %s2732_s7  ;;  %711 = vrot.lane.b32.xlu1 %v3135_v30, %s2732_s7  ;;  %v3174_v50 = vld [vmem:[%s2820_s5 + $0x172] sm:$0xff] }
  0xb4   : > { %709 = vrot.lane.b32.xlu0 %v3138_v60, %s2732_s7  ;;  %4788 = vst [vmem:[#allocation33_spill] sm:$0xff] %v3174_v50 }
  0xb5   : > { %v3146_v36 = vpop.permute.xlu2 %583  ;;  %v3148_v56 = vpop.permute.xlu1 %563 }
  0xb6   : > { %4779 = vst [vmem:[#allocation24_spill] sm:$0xff] %v3146_v36  ;;  %v3150_v44 = vpop.permute.xlu0 %561 }
  0xb7   : > { %4780 = vst [vmem:[#allocation25_spill] sm:$0xff] %v3148_v56  ;;  %v3199_v56 = vld [vmem:[%s2820_s5 + $0x30] sm:$0xff] }
  0xb8   : > { %4781 = vst [vmem:[#allocation26_spill] sm:$0xff] %v3150_v44  ;;  %v3177_v44 = vld [vmem:[%s2820_s5 + $0x18] sm:$0xff] }
  0xb9   : > { %4789 = vst [vmem:[#allocation34_spill] sm:$0xff] %v3177_v44 }
  0xba   : > { %4795 = vst [vmem:[#allocation40_spill] sm:$0xff] %v3199_v56 }
  0xbb   : > { %719 = vrot.lane.b32.xlu2 %v3153_v54, %s2732_s7  ;;  %717 = vrot.lane.b32.xlu1 %v3156_v35, %s2732_s7  ;;  %v3180_v54 = vld [vmem:[%s2820_s5 + $0x20] sm:$0xff]  ;;  %v3196_v35 = vld [vmem:[%s2820_s5 + $0x48] sm:$0xff] }
  0xbc   : > { %715 = vrot.lane.b32.xlu0 %v3159_v49, %s2732_s7  ;;  %4790 = vst [vmem:[#allocation35_spill] sm:$0xff] %v3180_v54  ;;  %v214_v49 = vld [vmem:[%s2820_s5 + $0x38] sm:$0xff] }
  0xbd   : > { %v3167_v36 = vpop.permute.xlu2 %589  ;;  %v3169_v61 = vpop.permute.xlu1 %569  ;;  %4794 = vst [vmem:[#allocation39_spill] sm:$0xff] %v3196_v35 }
  0xbe   : > { %4785 = vst [vmem:[#allocation30_spill] sm:$0xff] %v3167_v36  ;;  %v3171_v55 = vpop.permute.xlu0 %567 }
  0xbf   : > { %4786 = vst [vmem:[#allocation31_spill] sm:$0xff] %v3169_v61 }
  0xc0   : > { %4787 = vst [vmem:[#allocation32_spill] sm:$0xff] %v3171_v55 }
  0xc3   : > { %789 = vrot.lane.b32.xlu2 %v3180_v54, %s2733_s8  ;;  %787 = vrot.lane.b32.xlu1 %v3177_v44, %s2733_s8  ;;  %v217_v54 = vld [vmem:[%s2820_s5 + $0x60] sm:$0xff] }
  0xc4   : > { %721 = vrot.lane.b32.xlu0 %v3174_v50, %s2732_s7  ;;  %v3217_v50 = vld [vmem:[%s2820_s5 + $0x50] sm:$0xff] }
  0xc5   : > { %v3188_v36 = vpop.permute.xlu2 %659  ;;  %v3190_v55 = vpop.permute.xlu1 %575  ;;  %4800 = vst [vmem:[#allocation45_spill] sm:$0xff] %v3217_v50 }
  0xc6   : > { %4791 = vst [vmem:[#allocation36_spill] sm:$0xff] %v3188_v36  ;;  %v3192_v61 = vpop.permute.xlu0 %573 }
  0xc7   : > { %4792 = vst [vmem:[#allocation37_spill] sm:$0xff] %v3190_v55  ;;  %v3214_v55 = vld [vmem:[%s2820_s5 + $0x68] sm:$0xff] }
  0xc8   : > { %4793 = vst [vmem:[#allocation38_spill] sm:$0xff] %v3192_v61 }
  0xc9   : > { %4799 = vst [vmem:[#allocation44_spill] sm:$0xff] %v3214_v55 }
  0xcb   : > { %795 = vrot.lane.b32.xlu2 %v3196_v35, %s2733_s8  ;;  %793 = vrot.lane.b32.xlu1 %v214_v49, %s2733_s8 }
  0xcc   : > { %791 = vrot.lane.b32.xlu0 %v3199_v56, %s2733_s8  ;;  %v3235_v56 = vld [vmem:[%s2820_s5 + $0x78] sm:$0xff] }
  0xcd   : > { %v3206_v36 = vpop.permute.xlu2 %665  ;;  %v3208_v44 = vpop.permute.xlu1 %581  ;;  %4805 = vst [vmem:[#allocation50_spill] sm:$0xff] %v3235_v56 }
  0xce   : > { %4796 = vst [vmem:[#allocation41_spill] sm:$0xff] %v3206_v36  ;;  %v3210_v61 = vpop.permute.xlu0 %579  ;;  %v3232_v36 = vld [vmem:[%s2820_s5 + $0x90] sm:$0xff] }
  0xcf   : > { %4797 = vst [vmem:[#allocation42_spill] sm:$0xff] %v3208_v44  ;;  %v220_v44 = vld [vmem:[%s2820_s5 + $0x80] sm:$0xff] }
  0xd0   : > { %4798 = vst [vmem:[#allocation43_spill] sm:$0xff] %v3210_v61 }
  0xd1   : > { %4804 = vst [vmem:[#allocation49_spill] sm:$0xff] %v3232_v36 }
  0xd3   : > { %801 = vrot.lane.b32.xlu2 %v3214_v55, %s2733_s8  ;;  %799 = vrot.lane.b32.xlu1 %v217_v54, %s2733_s8  ;;  %v3252_v55 = vld [vmem:[%s2820_s5 + $0xb0] sm:$0xff] }
  0xd4   : > { %797 = vrot.lane.b32.xlu0 %v3217_v50, %s2733_s8  ;;  %v3249_v50 = vld [vmem:[%s2820_s5 + $0xa8] sm:$0xff]  ;;  %4810 = vst [vmem:[#allocation55_spill] sm:$0xff] %v3252_v55 }
  0xd5   : > { %v3224_v49 = vpop.permute.xlu2 %671  ;;  %v3226_v35 = vpop.permute.xlu1 %587  ;;  %4809 = vst [vmem:[#allocation54_spill] sm:$0xff] %v3249_v50 }
  0xd6   : > { %4801 = vst [vmem:[#allocation46_spill] sm:$0xff] %v3224_v49  ;;  %v3228_v61 = vpop.permute.xlu0 %585 }
  0xd7   : > { %4802 = vst [vmem:[#allocation47_spill] sm:$0xff] %v3226_v35 }
  0xd8   : > { %4803 = vst [vmem:[#allocation48_spill] sm:$0xff] %v3228_v61  ;;  %v3255_v61 = vld [vmem:[%s2820_s5 + $0x98] sm:$0xff] }
  0xd9   : > { %4811 = vst [vmem:[#allocation56_spill] sm:$0xff] %v3255_v61 }
  0xdb   : > { %807 = vrot.lane.b32.xlu2 %v3232_v36, %s2733_s8  ;;  %805 = vrot.lane.b32.xlu1 %v220_v44, %s2733_s8  ;;  %v3276_v36 = vld [vmem:[%s2820_s5 + $0xc0] sm:$0xff] }
  0xdc   : > { %803 = vrot.lane.b32.xlu0 %v3235_v56, %s2733_s8  ;;  %4817 = vst [vmem:[#allocation62_spill] sm:$0xff] %v3276_v36 }
  0xdd   : > { %v3242_v54 = vpop.permute.xlu2 %677  ;;  %v3244_v49 = vpop.permute.xlu1 %593 }
  0xde   : > { %4806 = vst [vmem:[#allocation51_spill] sm:$0xff] %v3242_v54  ;;  %v3246_v35 = vpop.permute.xlu0 %591  ;;  %v3273_v54 = vld [vmem:[%s2820_s5 + $0xd8] sm:$0xff] }
  0xdf   : > { %4807 = vst [vmem:[#allocation52_spill] sm:$0xff] %v3244_v49  ;;  %v3270_v49 = vld [vmem:[%s2820_s5 + $0xc8] sm:$0xff] }
  0xe0   : > { %4808 = vst [vmem:[#allocation53_spill] sm:$0xff] %v3246_v35 }
  0xe1   : > { %4815 = vst [vmem:[#allocation60_spill] sm:$0xff] %v3270_v49 }
  0xe2   : > { %4816 = vst [vmem:[#allocation61_spill] sm:$0xff] %v3273_v54 }
  0xe3   : > { %813 = vrot.lane.b32.xlu2 %v3252_v55, %s2733_s8  ;;  %811 = vrot.lane.b32.xlu1 %v3249_v50, %s2733_s8  ;;  %v3297_v55 = vld [vmem:[%s2820_s5 + $0xe0] sm:$0xff] }
  0xe4   : > { %809 = vrot.lane.b32.xlu0 %v3255_v61, %s2733_s8  ;;  %v3291_v61 = vld [vmem:[%s2820_s5 + $0xf0] sm:$0xff]  ;;  %4823 = vst [vmem:[#allocation68_spill] sm:$0xff] %v3297_v55 }
  0xe5   : > { %v3263_v44 = vpop.permute.xlu2 %683  ;;  %v3265_v56 = vpop.permute.xlu1 %663  ;;  %4821 = vst [vmem:[#allocation66_spill] sm:$0xff] %v3291_v61 }
  0xe6   : > { %4812 = vst [vmem:[#allocation57_spill] sm:$0xff] %v3263_v44  ;;  %v3267_v35 = vpop.permute.xlu0 %661 }
  0xe7   : > { %4813 = vst [vmem:[#allocation58_spill] sm:$0xff] %v3265_v56  ;;  %v3294_v56 = vld [vmem:[%s2820_s5 + $0xf8] sm:$0xff] }
  0xe8   : > { %4814 = vst [vmem:[#allocation59_spill] sm:$0xff] %v3267_v35 }
  0xe9   : > { %4822 = vst [vmem:[#allocation67_spill] sm:$0xff] %v3294_v56 }
  0xeb   : > { %819 = vrot.lane.b32.xlu2 %v3273_v54, %s2733_s8  ;;  %817 = vrot.lane.b32.xlu1 %v3270_v49, %s2733_s8  ;;  %v3312_v54 = vld [vmem:[%s2820_s5 + $0x110] sm:$0xff] }
  0xec   : > { %815 = vrot.lane.b32.xlu0 %v3276_v36, %s2733_s8  ;;  %4827 = vst [vmem:[#allocation72_spill] sm:$0xff] %v3312_v54  ;;  %v3318_v36 = vld [vmem:[%s2820_s5 + $0x108] sm:$0xff] }
  0xed   : > { %v3284_v44 = vpop.permute.xlu2 %689  ;;  %v3286_v35 = vpop.permute.xlu1 %669  ;;  %4829 = vst [vmem:[#allocation74_spill] sm:$0xff] %v3318_v36 }
  0xee   : > { %4818 = vst [vmem:[#allocation63_spill] sm:$0xff] %v3284_v44  ;;  %v3288_v50 = vpop.permute.xlu0 %667  ;;  %v3315_v44 = vld [vmem:[%s2820_s5 + $0x120] sm:$0xff] }
  0xef   : > { %4819 = vst [vmem:[#allocation64_spill] sm:$0xff] %v3286_v35 }
  0xf0   : > { %4820 = vst [vmem:[#allocation65_spill] sm:$0xff] %v3288_v50 }
  0xf1   : > { %4828 = vst [vmem:[#allocation73_spill] sm:$0xff] %v3315_v44 }
  0xf3   : > { %825 = vrot.lane.b32.xlu2 %v3294_v56, %s2733_s8  ;;  %823 = vrot.lane.b32.xlu1 %v3291_v61, %s2733_s8  ;;  %v3333_v56 = vld [vmem:[%s2820_s5 + $0x138] sm:$0xff] }
  0xf4   : > { %821 = vrot.lane.b32.xlu0 %v3297_v55, %s2733_s8  ;;  %4833 = vst [vmem:[#allocation78_spill] sm:$0xff] %v3333_v56  ;;  %v3339_v55 = vld [vmem:[%s2820_s5 + $0x128] sm:$0xff] }
  0xf5   : > { %v3305_v35 = vpop.permute.xlu2 %695  ;;  %v3307_v50 = vpop.permute.xlu1 %675  ;;  %4835 = vst [vmem:[#allocation80_spill] sm:$0xff] %v3339_v55 }
  0xf6   : > { %4824 = vst [vmem:[#allocation69_spill] sm:$0xff] %v3305_v35  ;;  %v3309_v49 = vpop.permute.xlu0 %673  ;;  %v3336_v35 = vld [vmem:[%s2820_s5 + $0x140] sm:$0xff] }
  0xf7   : > { %4825 = vst [vmem:[#allocation70_spill] sm:$0xff] %v3307_v50 }
  0xf8   : > { %4826 = vst [vmem:[#allocation71_spill] sm:$0xff] %v3309_v49 }
  0xf9   : > { %4834 = vst [vmem:[#allocation79_spill] sm:$0xff] %v3336_v35 }
  0xfb   : > { %831 = vrot.lane.b32.xlu2 %v3315_v44, %s2733_s8  ;;  %829 = vrot.lane.b32.xlu1 %v3312_v54, %s2733_s8  ;;  %v3357_v44 = vld [vmem:[%s2820_s5 + $0x168] sm:$0xff] }
  0xfc   : > { %827 = vrot.lane.b32.xlu0 %v3318_v36, %s2733_s8  ;;  %4840 = vst [vmem:[#allocation85_spill] sm:$0xff] %v3357_v44  ;;  %v3360_v36 = vld [vmem:[%s2820_s5 + $0x150] sm:$0xff] }
  0xfd   : > { %v3326_v50 = vpop.permute.xlu2 %701  ;;  %v3328_v49 = vpop.permute.xlu1 %681  ;;  %4841 = vst [vmem:[#allocation86_spill] sm:$0xff] %v3360_v36 }
  0xfe   : > { %4830 = vst [vmem:[#allocation75_spill] sm:$0xff] %v3326_v50  ;;  %v3330_v61 = vpop.permute.xlu0 %679  ;;  %v3354_v50 = vld [vmem:[%s2820_s5 + $0x158] sm:$0xff] }
  0xff   : > { %4831 = vst [vmem:[#allocation76_spill] sm:$0xff] %v3328_v49 }
 0x100   : > { %4832 = vst [vmem:[#allocation77_spill] sm:$0xff] %v3330_v61 }
 0x101   : > { %4839 = vst [vmem:[#allocation84_spill] sm:$0xff] %v3354_v50 }
 0x103   : > { %837 = vrot.lane.b32.xlu2 %v3336_v35, %s2733_s8  ;;  %835 = vrot.lane.b32.xlu1 %v3333_v56, %s2733_s8  ;;  %v2395_v35 = vld [vmem:[%s2820_s5 + $0x188] sm:$0xff] }
 0x104   : > { %833 = vrot.lane.b32.xlu0 %v3339_v55, %s2733_s8  ;;  %v3377_v55 = vld [vmem:[%s2820_s5 + $0x170] sm:$0xff] }
 0x105   : > { %v3347_v49 = vpop.permute.xlu2 %707  ;;  %v3349_v54 = vpop.permute.xlu1 %687 }
 0x106   : > { %4836 = vst [vmem:[#allocation81_spill] sm:$0xff] %v3347_v49  ;;  %v3351_v61 = vpop.permute.xlu0 %685  ;;  %v2394_v49 = vld [vmem:[%s2820_s5 + $0x180] sm:$0xff] }
 0x107   : > { %4837 = vst [vmem:[#allocation82_spill] sm:$0xff] %v3349_v54 }
 0x108   : > { %4838 = vst [vmem:[#allocation83_spill] sm:$0xff] %v3351_v61 }
 0x10b   : > { %843 = vrot.lane.b32.xlu2 %v3357_v44, %s2733_s8  ;;  %841 = vrot.lane.b32.xlu1 %v3354_v50, %s2733_s8 }
 0x10c   : > { %839 = vrot.lane.b32.xlu0 %v3360_v36, %s2733_s8 }
 0x10d   : > { %v3368_v56 = vpop.permute.xlu2 %713  ;;  %v3370_v54 = vpop.permute.xlu1 %693 }
 0x10e   : > { %4842 = vst [vmem:[#allocation87_spill] sm:$0xff] %v3370_v54  ;;  %v3372_v61 = vpop.permute.xlu0 %691 }
 0x113   : > { %849 = vrot.lane.b32.xlu2 %v2395_v35, %s2733_s8  ;;  %847 = vrot.lane.b32.xlu1 %v2394_v49, %s2733_s8 }
 0x114   : > { %845 = vrot.lane.b32.xlu0 %v3377_v55, %s2733_s8 }
 0x115   : > { %v3383_v50 = vpop.permute.xlu2 %719  ;;  %v3385_v36 = vpop.permute.xlu1 %699 }
 0x116   : > { %v3387_v44 = vpop.permute.xlu0 %697 }
 0x11b   : > { %919 = vrot.lane.b32.xlu2 %v2823_v0, %s2734_s9  ;;  %917 = vrot.lane.b32.xlu1 %v2838_v4, %s2734_s9 }
 0x11c   : > { %915 = vrot.lane.b32.xlu0 %v2826_v1, %s2734_s9 }
 0x11d   : > { %v3395_v35 = vpop.permute.xlu2 %789  ;;  %v3397_v49 = vpop.permute.xlu1 %705 }
 0x11e   : > { %v3399_v54 = vpop.permute.xlu0 %703 }
 0x123   : > { %925 = vrot.lane.b32.xlu2 %v2850_v7, %s2734_s9  ;;  %923 = vrot.lane.b32.xlu1 %v2853_v8, %s2734_s9 }
 0x124   : > { %921 = vrot.lane.b32.xlu0 %v2835_v3, %s2734_s9 }
 0x125   : > { %v3407_v0 = vpop.permute.xlu2 %795  ;;  %v3409_v4 = vpop.permute.xlu1 %711 }
 0x126   : > { %4843 = vst [vmem:[#allocation88_spill] sm:$0xff] %v3407_v0  ;;  %v3411_v1 = vpop.permute.xlu0 %709  ;;  %v4878_v0 = vld [vmem:[#allocation42_spill] sm:$0xff] }
 0x12b   : > { %931 = vrot.lane.b32.xlu2 %v2865_v10, %s2734_s9  ;;  %929 = vrot.lane.b32.xlu1 %v2868_v11, %s2734_s9 }
 0x12c   : > { %927 = vrot.lane.b32.xlu0 %v2847_v6, %s2734_s9 }
 0x12d   : > { %v3419_v7 = vpop.permute.xlu2 %801  ;;  %v3421_v8 = vpop.permute.xlu1 %717 }
 0x12e   : > { %4844 = vst [vmem:[#allocation89_spill] sm:$0xff] %v3419_v7  ;;  %v3423_v3 = vpop.permute.xlu0 %715  ;;  %v2427_v7 = vld [vmem:[%s2820_s5 + $0x189] sm:$0xff] }
 0x133   : > { %937 = vrot.lane.b32.xlu2 %v2880_v13, %s2734_s9  ;;  %935 = vrot.lane.b32.xlu1 %v2883_v14, %s2734_s9 }
 0x134   : > { %933 = vrot.lane.b32.xlu0 %v2862_v9, %s2734_s9 }
 0x135   : > { %v3431_v10 = vpop.permute.xlu2 %807  ;;  %v3433_v11 = vpop.permute.xlu1 %787 }
 0x136   : > { %v3435_v6 = vpop.permute.xlu0 %721 }
 0x13b   : > { %943 = vrot.lane.b32.xlu2 %v2895_v16, %s2734_s9  ;;  %941 = vrot.lane.b32.xlu1 %v2898_v17, %s2734_s9 }
 0x13c   : > { %939 = vrot.lane.b32.xlu0 %v2877_v12, %s2734_s9 }
 0x13d   : > { %v3443_v13 = vpop.permute.xlu2 %813  ;;  %v3445_v14 = vpop.permute.xlu1 %793 }
 0x13e   : > { %v3447_v9 = vpop.permute.xlu0 %791 }
 0x143   : > { %949 = vrot.lane.b32.xlu2 %v2910_v19, %s2734_s9  ;;  %947 = vrot.lane.b32.xlu1 %v2913_v20, %s2734_s9 }
 0x144   : > { %945 = vrot.lane.b32.xlu0 %v2892_v15, %s2734_s9 }
 0x145   : > { %v3455_v16 = vpop.permute.xlu2 %819  ;;  %v3457_v17 = vpop.permute.xlu1 %799 }
 0x146   : > { %4845 = vst [vmem:[#allocation90_spill] sm:$0xff] %v3457_v17  ;;  %v3459_v12 = vpop.permute.xlu0 %797 }
 0x147   : > { %4846 = vst [vmem:[#allocation91_spill] sm:$0xff] %v3459_v12  ;;  %v4864_v12 = vld [vmem:[#allocation63_spill] sm:$0xff] }
 0x14b   : > { %955 = vrot.lane.b32.xlu2 %v2925_v22, %s2734_s9  ;;  %953 = vrot.lane.b32.xlu1 %v2928_v23, %s2734_s9 }
 0x14c   : > { %951 = vrot.lane.b32.xlu0 %v2907_v18, %s2734_s9 }
 0x14d   : > { %v3467_v19 = vpop.permute.xlu2 %825  ;;  %v3469_v20 = vpop.permute.xlu1 %805 }
 0x14e   : > { %v3471_v15 = vpop.permute.xlu0 %803 }
 0x14f   : > { %4847 = vst [vmem:[#allocation92_spill] sm:$0xff] %v3471_v15 }
 0x153   : > { %961 = vrot.lane.b32.xlu2 %v2940_v25, %s2734_s9  ;;  %959 = vrot.lane.b32.xlu1 %v2943_v26, %s2734_s9 }
 0x154   : > { %957 = vrot.lane.b32.xlu0 %v2922_v21, %s2734_s9 }
 0x155   : > { %v3479_v22 = vpop.permute.xlu2 %831  ;;  %v3481_v18 = vpop.permute.xlu1 %811 }
 0x156   : > { %4848 = vst [vmem:[#allocation93_spill] sm:$0xff] %v3481_v18  ;;  %v3483_v23 = vpop.permute.xlu0 %809  ;;  %v2426_v18 = vld [vmem:[%s2820_s5 + $0x181] sm:$0xff] }
 0x157   : > { %4849 = vst [vmem:[#allocation94_spill] sm:$0xff] %v3483_v23 }
 0x15b   : > { %967 = vrot.lane.b32.xlu2 %v2955_v28, %s2734_s9  ;;  %965 = vrot.lane.b32.xlu1 %v2958_v29, %s2734_s9 }
 0x15c   : > { %963 = vrot.lane.b32.xlu0 %v2937_v24, %s2734_s9 }
 0x15d   : > { %v3491_v25 = vpop.permute.xlu2 %837  ;;  %v3493_v21 = vpop.permute.xlu1 %817 }
 0x15e   : > { %v3495_v26 = vpop.permute.xlu0 %815 }
 0x163   : > { %973 = vrot.lane.b32.xlu2 %v2968_v31, %s2734_s9  ;;  %971 = vrot.lane.b32.xlu1 %v2971_v32, %s2734_s9 }
 0x164   : > { %969 = vrot.lane.b32.xlu0 %v2952_v27, %s2734_s9 }
 0x165   : > { %v3503_v28 = vpop.permute.xlu2 %843  ;;  %v3505_v29 = vpop.permute.xlu1 %823 }
 0x166   : > { %v3507_v24 = vpop.permute.xlu0 %821 }
 0x16b   : > { %1043 = vrot.lane.b32.xlu2 %v2982_v34, %s2735_s10  ;;  %977 = vrot.lane.b32.xlu1 %v2427_v7, %s2734_s9 }
 0x16c   : > { %975 = vrot.lane.b32.xlu0 %v2426_v18, %s2734_s9 }
 0x16d   : > { %v3515_v31 = vpop.permute.xlu2 %849  ;;  %v3517_v32 = vpop.permute.xlu1 %829 }
 0x16e   : > { %v3519_v27 = vpop.permute.xlu0 %827 }
 0x173   : > { %1049 = vrot.lane.b32.xlu2 %v2996_v38, %s2735_s10  ;;  %1047 = vrot.lane.b32.xlu1 %v2999_v39, %s2735_s10 }
 0x174   : > { %1045 = vrot.lane.b32.xlu0 %v2979_v33, %s2735_s10 }
 0x175   : > { %v3527_v34 = vpop.permute.xlu2 %919  ;;  %v3529_v7 = vpop.permute.xlu1 %835 }
 0x176   : > { %v3531_v18 = vpop.permute.xlu0 %833 }
 0x17b   : > { %1055 = vrot.lane.b32.xlu2 %v3013_v42, %s2735_s10  ;;  %1053 = vrot.lane.b32.xlu1 %v3016_v43, %s2735_s10 }
 0x17c   : > { %1051 = vrot.lane.b32.xlu0 %v2993_v37, %s2735_s10 }
 0x17d   : > { %v3539_v38 = vpop.permute.xlu2 %925  ;;  %v3541_v39 = vpop.permute.xlu1 %841 }
 0x17e   : > { %4850 = vst [vmem:[#allocation95_spill] sm:$0xff] %v3539_v38  ;;  %v3543_v33 = vpop.permute.xlu0 %839 }
 0x183   : > { %1061 = vrot.lane.b32.xlu2 %v3030_v46, %s2735_s10  ;;  %1059 = vrot.lane.b32.xlu1 %v3033_v47, %s2735_s10 }
 0x184   : > { %1057 = vrot.lane.b32.xlu0 %v3010_v41, %s2735_s10 }
 0x185   : > { %v3551_v42 = vpop.permute.xlu2 %931  ;;  %v3553_v43 = vpop.permute.xlu1 %847 }
 0x186   : > { %4851 = vst [vmem:[#allocation96_spill] sm:$0xff] %v3551_v42  ;;  %v3555_v37 = vpop.permute.xlu0 %845  ;;  %v4879_v42 = vld [vmem:[#allocation80_spill] sm:$0xff] }
 0x18b   : > { %1067 = vrot.lane.b32.xlu2 %v3051_v52, %s2735_s10  ;;  %1065 = vrot.lane.b32.xlu1 %v3054_v53, %s2735_s10 }
 0x18c   : > { %1063 = vrot.lane.b32.xlu0 %v3027_v45, %s2735_s10 }
 0x18d   : > { %v3563_v46 = vpop.permute.xlu2 %937  ;;  %v3565_v47 = vpop.permute.xlu1 %917 }
 0x18e   : > { %4852 = vst [vmem:[#allocation97_spill] sm:$0xff] %v3563_v46  ;;  %v3567_v41 = vpop.permute.xlu0 %915  ;;  %v4861_v46 = vld [vmem:[#allocation26_spill] sm:$0xff] }
 0x193   : > { %1073 = vrot.lane.b32.xlu2 %v3072_v58, %s2735_s10  ;;  %1071 = vrot.lane.b32.xlu1 %v3075_v59, %s2735_s10 }
 0x194   : > { %1069 = vrot.lane.b32.xlu0 %v3048_v51, %s2735_s10 }
 0x195   : > { %v3575_v52 = vpop.permute.xlu2 %943  ;;  %v3577_v53 = vpop.permute.xlu1 %923 }
 0x196   : > { %4853 = vst [vmem:[#allocation98_spill] sm:$0xff] %v3577_v53  ;;  %v3579_v45 = vpop.permute.xlu0 %921  ;;  %v4866_v53 = vld [vmem:[#allocation68_spill] sm:$0xff] }
 0x19b   : > { %1079 = vrot.lane.b32.xlu2 %v3093_v2, %s2735_s10  ;;  %1077 = vrot.lane.b32.xlu1 %v3096_v5, %s2735_s10 }
 0x19c   : > { %1075 = vrot.lane.b32.xlu0 %v3069_v57, %s2735_s10 }
 0x19d   : > { %v3587_v58 = vpop.permute.xlu2 %949  ;;  %v3589_v59 = vpop.permute.xlu1 %929 }
 0x19e   : > { %4854 = vst [vmem:[#allocation99_spill] sm:$0xff] %v3589_v59  ;;  %v3591_v51 = vpop.permute.xlu0 %927  ;;  %v4857_v59 = vld [vmem:[#allocation25_spill] sm:$0xff] }
 0x19f   : > { %4855 = vst [vmem:[#allocation100_spill] sm:$0xff] %v3591_v51  ;;  %v4858_v51 = vld [vmem:[#allocation62_spill] sm:$0xff] }
 0x1a0   : > { %v1540_v17 = vsel %vm1523_vm0, %v4858_v51, %v4857_v59 }
 0x1a1   : > { %v1573_v38 = vsel %vm1556_vm1, %v1540_v17, %v3372_v61 }
 0x1a2   : > { %v1606_v51 = vsel %vm1589_vm2, %v1573_v38, %v3455_v16  ;;  %v4867_v16 = vld [vmem:[#allocation40_spill] sm:$0xff]  ;;  %v4870_v38 = vld [vmem:[#allocation61_spill] sm:$0xff] }
 0x1a3   : > { %1085 = vrot.lane.b32.xlu2 %v3114_v48, %s2735_s10  ;;  %1083 = vrot.lane.b32.xlu1 %v3117_v40, %s2735_s10 }
 0x1a4   : > { %1081 = vrot.lane.b32.xlu0 %v3090_v63, %s2735_s10 }
 0x1a5   : > { %v3599_v2 = vpop.permute.xlu2 %955  ;;  %v3601_v5 = vpop.permute.xlu1 %935 }
 0x1a6   : > { %v3603_v57 = vpop.permute.xlu0 %933 }
 0x1ab   : > { %1091 = vrot.lane.b32.xlu2 %v3135_v30, %s2735_s10  ;;  %1089 = vrot.lane.b32.xlu1 %v3138_v60, %s2735_s10  ;;  %v4859_v30 = vld [vmem:[#allocation28_spill] sm:$0xff]  ;;  %v4860_v60 = vld [vmem:[#allocation29_spill] sm:$0xff] }
 0x1ac   : > { %1087 = vrot.lane.b32.xlu0 %v3111_v62, %s2735_s10  ;;  %v4862_v62 = vld [vmem:[#allocation55_spill] sm:$0xff] }
 0x1ad   : > { %v3611_v48 = vpop.permute.xlu2 %961  ;;  %v3613_v40 = vpop.permute.xlu1 %941  ;;  %v1539_v23 = vsel %vm1523_vm0, %v4862_v62, %v4861_v46 }
 0x1ae   : > { %v3615_v63 = vpop.permute.xlu0 %939  ;;  %v1572_v59 = vsel %vm1556_vm1, %v1539_v23, %v4864_v12  ;;  %v4868_v23 = vld [vmem:[#allocation33_spill] sm:$0xff] }
 0x1af   : > { %4856 = vst [vmem:[#allocation101_spill] sm:$0xff] %v3615_v63  ;;  %v4863_v63 = vld [vmem:[#allocation23_spill] sm:$0xff]  ;;  %v1605_v46 = vsel %vm1589_vm2, %v1572_v59, %v3493_v21  ;;  %v4869_v21 = vld [vmem:[#allocation32_spill] sm:$0xff] }
 0x1b0   : > { %v1542_v59 = vsel %vm1523_vm0, %v4870_v38, %v4869_v21 }
 0x1b3   : > { %1097 = vrot.lane.b32.xlu2 %v4859_v30, %s2735_s10  ;;  %1095 = vrot.lane.b32.xlu1 %v4860_v60, %s2735_s10 }
 0x1b4   : > { %1093 = vrot.lane.b32.xlu0 %v4863_v63, %s2735_s10  ;;  %v4865_v63 = vld [vmem:[#allocation31_spill] sm:$0xff] }
 0x1b5   : > { %v3635_v30 = vpop.permute.xlu2 %967  ;;  %v948_v60 = vpop.permute.xlu1 %947  ;;  %v1543_v12 = vsel %vm1523_vm0, %v4866_v53, %v4865_v63  ;;  %v4872_v53 = vld [vmem:[#allocation69_spill] sm:$0xff] }
 0x1b6   : > { %v3640_v62 = vsel %vm1622_vm3, %v1606_v51, %v948_v60  ;;  %v946_v61 = vpop.permute.xlu0 %945  ;;  %v1576_v51 = vsel %vm1556_vm1, %v1543_v12, %v3387_v44  ;;  %v4871_v60 = vld [vmem:[#allocation27_spill] sm:$0xff] }
 0x1b7   : > { %v3643_v17 = vsel %vm1622_vm3, %v1605_v46, %v946_v61  ;;  %v1575_v46 = vsel %vm1556_vm1, %v1542_v59, %v4872_v53  ;;  %v1609_v61 = vsel %vm1589_vm2, %v1576_v51, %v3467_v19  ;;  %v2461_v12 = vld [vmem:[%s2820_s5 + $0x38] sm:$0xff]  ;;  %v4873_v53 = vld [vmem:[#allocation37_spill] sm:$0xff]  ;;  %v4874_v19 = vld [vmem:[#allocation74_spill] sm:$0xff] }
 0x1b8   : > { %v2524_v59 = vld [vmem:[%s2820_s5 + $0x32] sm:$0xff]  ;;  %v1546_v51 = vsel %vm1523_vm0, %v4874_v19, %v4873_v53 }
 0x1b9   : > { %v2493_v53 = vld [vmem:[%s2820_s5 + $0x39] sm:$0xff] }
 0x1ba   : > { %v4876_v19 = vld [vmem:[#allocation35_spill] sm:$0xff] }
 0x1bb   : > { %1171 = vrot.lane.b32.xlu2 %v4867_v16, %s2736_s11  ;;  %1101 = vrot.lane.b32.xlu1 %v4868_v23, %s2735_s10  ;;  %v1608_v23 = vsel %vm1589_vm2, %v1575_v46, %v3505_v29  ;;  %v1579_v29 = vsel %vm1556_vm1, %v1546_v51, %v3399_v54  ;;  %v4877_v51 = vld [vmem:[#allocation41_spill] sm:$0xff] }
 0x1bc   : > { %1099 = vrot.lane.b32.xlu0 %v4871_v60, %s2735_s10  ;;  %v2492_v60 = vld [vmem:[%s2820_s5 + $0x31] sm:$0xff]  ;;  %v1612_v46 = vsel %vm1589_vm2, %v1579_v29, %v3479_v22  ;;  %v1549_v22 = vsel %vm1523_vm0, %v4879_v42, %v4878_v0  ;;  %v4883_v0 = vld [vmem:[#allocation81_spill] sm:$0xff] }
 0x1bd   : > { %v3663_v63 = vpop.permute.xlu2 %973  ;;  %v954_v16 = vpop.permute.xlu1 %953  ;;  %v4880_v29 = vld [vmem:[#allocation39_spill] sm:$0xff] }
 0x1be   : > { %v3668_v21 = vsel %vm1622_vm3, %v1609_v61, %v954_v16  ;;  %v952_v38 = vpop.permute.xlu0 %951 }
 0x1bf   : > { %v3671_v44 = vsel %vm1622_vm3, %v1608_v23, %v952_v38 }
 0x1c3   : > { %1173 = vrot.lane.b32.xlu2 %v2461_v12, %s2736_s11  ;;  %1427 = vrot.lane.b32.xlu1 %v2524_v59, %s2737_s12  ;;  %v2525_v12 = vld [vmem:[%s2820_s5 + $0x3a] sm:$0xff] }
 0x1c4   : > { %1299 = vrot.lane.b32.xlu0 %v2492_v60, %s2738_s13  ;;  %v4875_v59 = vld [vmem:[#allocation12_spill] sm:$0xff] }
 0x1c5   : > { %v3686_v61 = vpop.permute.xlu2 %1043  ;;  %v960_v16 = vpop.permute.xlu1 %959  ;;  %v1527_v54 = vsel %vm1523_vm0, %v4876_v19, %v4875_v59  ;;  %v1582_v59 = vsel %vm1556_vm1, %v1549_v22, %v3411_v1 }
 0x1c6   : > { %v3689_v23 = vsel %vm1622_vm3, %v1612_v46, %v960_v16  ;;  %v3691_v38 = vpop.permute.xlu0 %957  ;;  %v1560_v60 = vsel %vm1556_vm1, %v1527_v54, %v4877_v51  ;;  %v4881_v46 = vld [vmem:[#allocation43_spill] sm:$0xff]  ;;  %v4882_v16 = vld [vmem:[#allocation73_spill] sm:$0xff] }
 0x1c7   : > { %v1548_v15 = vsel %vm1523_vm0, %v4882_v16, %v4881_v46  ;;  %v1593_v19 = vsel %vm1589_vm2, %v1560_v60, %v3445_v14  ;;  %v4884_v60 = vld [vmem:[#allocation48_spill] sm:$0xff]  ;;  %v4886_v16 = vld [vmem:[#allocation49_spill] sm:$0xff] }
 0x1c8   : > { %v1581_v42 = vsel %vm1556_vm1, %v1548_v15, %v4883_v0  ;;  %v1626_v54 = vsel %vm1622_vm3, %v1593_v19, %v3579_v45  ;;  %v2494_v45 = vld [vmem:[%s2820_s5 + $0x49] sm:$0xff] }
 0x1c9   : > { %v1614_v1 = vsel %vm1589_vm2, %v1581_v42, %v3529_v7  ;;  %v4885_v7 = vld [vmem:[#allocation79_spill] sm:$0xff] }
 0x1ca   : > { %v1551_v46 = vsel %vm1523_vm0, %v4885_v7, %v4884_v60  ;;  %v4890_v60 = vld [vmem:[#allocation52_spill] sm:$0xff] }
 0x1cb   : > { %1175 = vrot.lane.b32.xlu2 %v4880_v29, %s2736_s11  ;;  %1429 = vrot.lane.b32.xlu1 %v2525_v12, %s2737_s12  ;;  %v1615_v12 = vsel %vm1589_vm2, %v1582_v59, %v3491_v25  ;;  %v1584_v59 = vsel %vm1556_vm1, %v1551_v46, %v3368_v56  ;;  %v1555_v7 = vsel %vm1523_vm0, %v3377_v55, %v4890_v60  ;;  %v4891_v46 = vld [vmem:[#allocation45_spill] sm:$0xff]  ;;  %v4896_v60 = vld [vmem:[#allocation34_spill] sm:$0xff] }
 0x1cc   : > { %1301 = vrot.lane.b32.xlu0 %v2493_v53, %s2738_s13  ;;  %v2500_v53 = vld [vmem:[%s2820_s5 + $0x91] sm:$0xff]  ;;  %v1617_v42 = vsel %vm1589_vm2, %v1584_v59, %v3541_v39  ;;  %v4892_v39 = vld [vmem:[#allocation53_spill] sm:$0xff] }
 0x1cd   : > { %v1050_v51 = vpop.permute.xlu2 %1049  ;;  %v966_v29 = vpop.permute.xlu1 %965 }
 0x1ce   : > { %v3723_v22 = vsel %vm1655_vm4, %v1626_v54, %v1050_v51  ;;  %v3726_v14 = vsel %vm1622_vm3, %v1615_v12, %v966_v29  ;;  %v964_v15 = vpop.permute.xlu0 %963  ;;  %v2532_v51 = vld [vmem:[%s2820_s5 + $0x92] sm:$0xff]  ;;  %v2526_v29 = vld [vmem:[%s2820_s5 + $0x4a] sm:$0xff] }
 0x1cf   : > { %v3729_v25 = vsel %vm1622_vm3, %v1614_v1, %v964_v15  ;;  %v4887_v1 = vld [vmem:[#allocation19_spill] sm:$0xff]  ;;  %v4888_v15 = vld [vmem:[#allocation44_spill] sm:$0xff] }
 0x1d3   : > { %1315 = vrot.lane.b32.xlu2 %v2500_v53, %s2738_s13  ;;  %1303 = vrot.lane.b32.xlu1 %v2494_v45, %s2738_s13  ;;  %v1533_v53 = vsel %vm1523_vm0, %v4888_v15, %v4887_v1  ;;  %v4889_v45 = vld [vmem:[#allocation51_spill] sm:$0xff] }
 0x1d4   : > { %1187 = vrot.lane.b32.xlu0 %v4886_v16, %s2736_s11  ;;  %v1566_v56 = vsel %vm1556_vm1, %v1533_v53, %v4889_v45  ;;  %v4893_v16 = vld [vmem:[#allocation85_spill] sm:$0xff] }
 0x1d5   : > { %v3742_v19 = vpop.permute.xlu2 %1055  ;;  %v3744_v0 = vpop.permute.xlu1 %971  ;;  %v1554_v59 = vsel %vm1523_vm0, %v4893_v16, %v4892_v39  ;;  %v4898_v16 = vld [vmem:[#allocation56_spill] sm:$0xff] }
 0x1d6   : > { %v970_v12 = vpop.permute.xlu0 %969  ;;  %v1587_v55 = vsel %vm1556_vm1, %v1554_v59, %v3383_v50 }
 0x1d7   : > { %v3749_v54 = vsel %vm1622_vm3, %v1617_v42, %v970_v12  ;;  %v1588_v42 = vsel %vm1556_vm1, %v1555_v7, %v3435_v6  ;;  %v1599_v12 = vsel %vm1589_vm2, %v1566_v56, %v3469_v20  ;;  %v1620_v45 = vsel %vm1589_vm2, %v1587_v55, %v3553_v43  ;;  %v4895_v56 = vld [vmem:[#allocation9_spill] sm:$0xff]  ;;  %v4897_v43 = vld [vmem:[#allocation58_spill] sm:$0xff] }
 0x1d8   : > { %v1621_v1 = vsel %vm1589_vm2, %v1588_v42, %v3515_v31  ;;  %v2501_v31 = vld [vmem:[%s2820_s5 + $0x99] sm:$0xff]  ;;  %v1526_v7 = vsel %vm1523_vm0, %v4896_v60, %v4895_v56  ;;  %v2508_v56 = vld [vmem:[%s2820_s5 + $0xf1] sm:$0xff] }
 0x1db   : > { %1177 = vrot.lane.b32.xlu2 %v4891_v46, %s2736_s11  ;;  %1443 = vrot.lane.b32.xlu1 %v2532_v51, %s2737_s12  ;;  %v1632_v51 = vsel %vm1622_vm3, %v1599_v12, %v3603_v57  ;;  %v2495_v57 = vld [vmem:[%s2820_s5 + $0x51] sm:$0xff]  ;;  %v1559_v46 = vsel %vm1556_vm1, %v1526_v7, %v4897_v43 }
 0x1dc   : > { %1431 = vrot.lane.b32.xlu0 %v2526_v29, %s2737_s12  ;;  %v1592_v39 = vsel %vm1589_vm2, %v1559_v46, %v3447_v9  ;;  %v2476_v9 = vld [vmem:[%s2820_s5 + $0xf0] sm:$0xff] }
 0x1dd   : > { %v1062_v15 = vpop.permute.xlu2 %1061  ;;  %v978_v53 = vpop.permute.xlu1 %977  ;;  %v1625_v59 = vsel %vm1622_vm3, %v1592_v39, %v3527_v34  ;;  %v2502_v46 = vld [vmem:[%s2820_s5 + $0xa9] sm:$0xff]  ;;  %v2496_v39 = vld [vmem:[%s2820_s5 + $0x61] sm:$0xff] }
 0x1de   : > { %v3781_v6 = vsel %vm1655_vm4, %v1632_v51, %v1062_v15  ;;  %v3784_v20 = vsel %vm1622_vm3, %v1621_v1, %v978_v53  ;;  %v976_v29 = vpop.permute.xlu0 %975  ;;  %v2533_v51 = vld [vmem:[%s2820_s5 + $0x9a] sm:$0xff]  ;;  %v2527_v15 = vld [vmem:[%s2820_s5 + $0x52] sm:$0xff] }
 0x1df   : > { %4894 = vst [vmem:[#allocation25_spill] sm:$0xff] %v3784_v20  ;;  %v3787_v50 = vsel %vm1622_vm3, %v1620_v45, %v976_v29 }
 0x1e3   : > { %1317 = vrot.lane.b32.xlu2 %v2501_v31, %s2738_s13  ;;  %1305 = vrot.lane.b32.xlu1 %v2495_v57, %s2738_s13  ;;  %v2464_v31 = vld [vmem:[%s2820_s5 + $0x60] sm:$0xff]  ;;  %v2540_v57 = vld [vmem:[%s2820_s5 + $0xf2] sm:$0xff] }
 0x1e4   : > { %1189 = vrot.lane.b32.xlu0 %v4898_v16, %s2736_s11 }
 0x1e5   : > { %v3804_v42 = vpop.permute.xlu2 %1067  ;;  %v1048_v12 = vpop.permute.xlu1 %1047 }
 0x1e6   : > { %v3807_v55 = vsel %vm1655_vm4, %v1625_v59, %v1048_v12  ;;  %v3809_v1 = vpop.permute.xlu0 %1045  ;;  %v2470_v59 = vld [vmem:[%s2820_s5 + $0xa8] sm:$0xff] }
 0x1e7   : > { %v4899_v12 = vld [vmem:[#allocation38_spill] sm:$0xff] }
 0x1eb   : > { %1445 = vrot.lane.b32.xlu2 %v2533_v51, %s2737_s12  ;;  %1433 = vrot.lane.b32.xlu1 %v2527_v15, %s2737_s12  ;;  %v4900_v51 = vld [vmem:[#allocation67_spill] sm:$0xff] }
 0x1ec   : > { %1203 = vrot.lane.b32.xlu0 %v2476_v9, %s2736_s11  ;;  %v1545_v15 = vsel %vm1523_vm0, %v4900_v51, %v4899_v12  ;;  %v4901_v9 = vld [vmem:[#allocation18_spill] sm:$0xff] }
 0x1ed   : > { %v1074_v34 = vpop.permute.xlu2 %1073  ;;  %v3817_v53 = vpop.permute.xlu1 %1053 }
 0x1ee   : > { %v3821_v45 = vsel %vm1655_vm4, %v3643_v17, %v1074_v34  ;;  %v3823_v29 = vpop.permute.xlu0 %1051  ;;  %v4902_v34 = vld [vmem:[#allocation50_spill] sm:$0xff] }
 0x1f3   : > { %1179 = vrot.lane.b32.xlu2 %v2464_v31, %s2736_s11  ;;  %1459 = vrot.lane.b32.xlu1 %v2540_v57, %s2737_s12  ;;  %v1534_v31 = vsel %vm1523_vm0, %v4902_v34, %v4901_v9  ;;  %v4903_v57 = vld [vmem:[#allocation75_spill] sm:$0xff] }
 0x1f4   : > { %1331 = vrot.lane.b32.xlu0 %v2508_v56, %s2738_s13  ;;  %v1578_v56 = vsel %vm1556_vm1, %v1545_v15, %v4903_v57  ;;  %v2528_v57 = vld [vmem:[%s2820_s5 + $0x62] sm:$0xff] }
 0x1f5   : > { %v1080_v60 = vpop.permute.xlu2 %1079  ;;  %v3831_v7 = vpop.permute.xlu1 %1059  ;;  %v1611_v20 = vsel %vm1589_vm2, %v1578_v56, %v3517_v32  ;;  %v4905_v56 = vld [vmem:[#allocation11_spill] sm:$0xff] }
 0x1f6   : > { %v3835_v43 = vsel %vm1655_vm4, %v3671_v44, %v1080_v60  ;;  %v3837_v17 = vpop.permute.xlu0 %1057  ;;  %v4904_v44 = vld [vmem:[#allocation77_spill] sm:$0xff]  ;;  %v1644_v9 = vsel %vm1622_vm3, %v1611_v20, %v3691_v38 }
 0x1f7   : > { %v1567_v60 = vsel %vm1556_vm1, %v1534_v31, %v4904_v44  ;;  %v4907_v38 = vld [vmem:[#allocation21_spill] sm:$0xff] }
 0x1f8   : > { %v1600_v12 = vsel %vm1589_vm2, %v1567_v60, %v3431_v10  ;;  %v4906_v10 = vld [vmem:[#allocation54_spill] sm:$0xff]  ;;  %v1537_v20 = vsel %vm1523_vm0, %v4898_v16, %v4907_v38  ;;  %v2509_v38 = vld [vmem:[%s2820_s5 + $0xf9] sm:$0xff] }
 0x1f9   : > { %v1538_v44 = vsel %vm1523_vm0, %v4906_v10, %v4905_v56  ;;  %v4908_v60 = vld [vmem:[#allocation82_spill] sm:$0xff] }
 0x1fb   : > { %1319 = vrot.lane.b32.xlu2 %v2502_v46, %s2738_s13  ;;  %1307 = vrot.lane.b32.xlu1 %v2496_v39, %s2738_s13  ;;  %v1633_v46 = vsel %vm1622_vm3, %v1600_v12, %v3601_v5  ;;  %v1571_v5 = vsel %vm1556_vm1, %v1538_v44, %v4908_v60  ;;  %v4909_v12 = vld [vmem:[#allocation83_spill] sm:$0xff] }
 0x1fc   : > { %1191 = vrot.lane.b32.xlu0 %v2470_v59, %s2736_s11  ;;  %v2534_v59 = vld [vmem:[%s2820_s5 + $0xaa] sm:$0xff]  ;;  %v2541_v44 = vld [vmem:[%s2820_s5 + $0xfa] sm:$0xff] }
 0x1fd   : > { %v1086_v34 = vpop.permute.xlu2 %1085  ;;  %v3861_v15 = vpop.permute.xlu1 %1065 }
 0x1fe   : > { %v3866_v39 = vsel %vm1655_vm4, %v1644_v9, %v1086_v34  ;;  %v1064_v31 = vpop.permute.xlu0 %1063  ;;  %v1570_v9 = vsel %vm1556_vm1, %v1537_v20, %v4909_v12  ;;  %v1604_v34 = vsel %vm1589_vm2, %v1571_v5, %v3495_v26  ;;  %v4911_v20 = vld [vmem:[#allocation60_spill] sm:$0xff]  ;;  %v4912_v5 = vld [vmem:[#allocation87_spill] sm:$0xff] }
 0x1ff   : > { %v3869_v32 = vsel %vm1655_vm4, %v1633_v46, %v1064_v31  ;;  %v1603_v16 = vsel %vm1589_vm2, %v1570_v9, %v3443_v13  ;;  %v1637_v46 = vsel %vm1622_vm3, %v1604_v34, %v3575_v52  ;;  %v2465_v13 = vld [vmem:[%s2820_s5 + $0x68] sm:$0xff] }
 0x200   : > { %v4910_v52 = vld [vmem:[#allocation14_spill] sm:$0xff] }
 0x201   : > { %v1541_v60 = vsel %vm1523_vm0, %v4911_v20, %v4910_v52 }
 0x203   : > { %1447 = vrot.lane.b32.xlu2 %v2534_v59, %s2737_s12  ;;  %1435 = vrot.lane.b32.xlu1 %v2528_v57, %s2737_s12  ;;  %v1636_v57 = vsel %vm1622_vm3, %v1603_v16, %v3613_v40  ;;  %v1574_v40 = vsel %vm1556_vm1, %v1541_v60, %v4912_v5  ;;  %v1788_v60 = vld [vmem:[%s4720_s1 + $0x8] sm:$0xff] }
 0x204   : > { %1205 = vrot.lane.b32.xlu0 %v4900_v51, %s2736_s11 }
 0x205   : > { %v1092_v31 = vpop.permute.xlu2 %1091  ;;  %v1072_v59 = vpop.permute.xlu1 %1071 }
 0x206   : > { %v3897_v56 = vsel %vm1655_vm4, %v3729_v25, %v1092_v31  ;;  %v3900_v26 = vsel %vm1655_vm4, %v1637_v46, %v1072_v59  ;;  %v1070_v10 = vpop.permute.xlu0 %1069  ;;  %v1607_v25 = vsel %vm1589_vm2, %v1574_v40, %v3507_v24  ;;  %v1791_v24 = vld [vmem:[%s4720_s1 + $0x20] sm:$0xf] }
 0x207   : > { %v3903_v51 = vsel %vm1655_vm4, %v1636_v57, %v1070_v10  ;;  %v1640_v12 = vsel %vm1622_vm3, %v1607_v25, %v3587_v58  ;;  %v1790_v58 = vld [vmem:[%s4720_s1 + $0x18] sm:$0xff]  ;;  %2556 = vmatpush.msk.msra.mxu0 %vm1893_vm5, %v1791_v24  ;;  %2594 = vmatpush.msk.msra.mxu1 %vm1893_vm5, %v1791_v24  ;;  %v2471_v10 = vld [vmem:[%s2820_s5 + $0xb0] sm:$0xff] }
 0x208   : > { %v2503_v57 = vld [vmem:[%s2820_s5 + $0xb1] sm:$0xff]  ;;  %2595 = vmatpush.msk.msra.mxu2 %vm1893_vm5, %v1791_v24  ;;  %2596 = vmatpush.msk.msra.mxu3 %vm1893_vm5, %v1791_v24  ;;  %v4916_v24 = vld [vmem:[#allocation72_spill] sm:$0xff] }
 0x209   : > { %1909 = vmatpush.msra.mxu0 %v1790_v58  ;;  %2597 = vmatpush.msra.mxu1 %v1790_v58 }
 0x20a   : > { %2598 = vmatpush.msra.mxu2 %v1790_v58  ;;  %2599 = vmatpush.msra.mxu3 %v1790_v58 }
 0x20b   : > { %1181 = vrot.lane.b32.xlu2 %v2465_v13, %s2736_s11  ;;  %1461 = vrot.lane.b32.xlu1 %v2541_v44, %s2737_s12  ;;  %v1789_v13 = vld [vmem:[%s4720_s1 + $0x10] sm:$0xff] }
 0x20c   : > { %1333 = vrot.lane.b32.xlu0 %v2509_v38, %s2738_s13  ;;  %v4914_v44 = vld [vmem:[#allocation66_spill] sm:$0xff]  ;;  %1910 = vmatpush.msra.mxu0 %v1789_v13 }
 0x20d   : > { %v1098_v9 = vpop.permute.xlu2 %1097  ;;  %v1078_v34 = vpop.permute.xlu1 %1077  ;;  %2600 = vmatpush.msra.mxu1 %v1789_v13  ;;  %2601 = vmatpush.msra.mxu2 %v1789_v13 }
 0x20e   : > { %v3922_v16 = vsel %vm1655_vm4, %v3749_v54, %v1098_v9  ;;  %v3925_v46 = vsel %vm1655_vm4, %v1640_v12, %v1078_v34  ;;  %v1076_v31 = vpop.permute.xlu0 %1075  ;;  %v2497_v54 = vld [vmem:[%s2820_s5 + $0x69] sm:$0xff]  ;;  %1911 = vmatpush.msra.mxu0 %v1788_v60  ;;  %2602 = vmatpush.msra.mxu3 %v1789_v13 }
 0x20f   : > { %v3929_v59 = vsel %vm1655_vm4, %v3640_v62, %v1076_v31  ;;  %v4913_v62 = vld [vmem:[#allocation17_spill] sm:$0xff]  ;;  %2603 = vmatpush.msra.mxu1 %v1788_v60  ;;  %2604 = vmatpush.msra.mxu2 %v1788_v60  ;;  %v4915_v31 = vld [vmem:[#allocation20_spill] sm:$0xff] }
 0x210   : > { %v1544_v38 = vsel %vm1523_vm0, %v4914_v44, %v4913_v62  ;;  %v2529_v9 = vld [vmem:[%s2820_s5 + $0x6a] sm:$0xff]  ;;  %v1547_v58 = vsel %vm1523_vm0, %v4916_v24, %v4915_v31  ;;  %2605 = vmatpush.msra.mxu3 %v1788_v60  ;;  %v4918_v60 = vld [vmem:[#allocation24_spill] sm:$0xff] }
 0x211   : > { %v1577_v52 = vsel %vm1556_vm1, %v1544_v38, %v3385_v36  ;;  %v2478_v34 = vld [vmem:[%s2820_s5 + $0x108] sm:$0xff]  ;;  %v2466_v24 = vld [vmem:[%s2820_s5 + $0x78] sm:$0xff] }
 0x212   : > { %v1610_v20 = vsel %vm1589_vm2, %v1577_v52, %v3519_v27  ;;  %v2510_v52 = vld [vmem:[%s2820_s5 + $0x109] sm:$0xff] }
 0x213   : > { %1321 = vrot.lane.b32.xlu2 %v2503_v57, %s2738_s13  ;;  %1309 = vrot.lane.b32.xlu1 %v2497_v54, %s2738_s13  ;;  %v1643_v5 = vsel %vm1622_vm3, %v1610_v20, %v3599_v2  ;;  %v1787_v2 = vld [vmem:[%s4720_s1] sm:$0xff]  ;;  %v4917_v57 = vld [vmem:[#allocation86_spill] sm:$0xff] }
 0x214   : > { %1193 = vrot.lane.b32.xlu0 %v2471_v10, %s2736_s11  ;;  %1912 = vmatpush.msra.mxu0 %v1787_v2  ;;  %v2535_v20 = vld [vmem:[%s2820_s5 + $0xb2] sm:$0xff] }
 0x215   : > { %v3958_v36 = vpop.permute.xlu2 %1171  ;;  %v1084_v40 = vpop.permute.xlu1 %1083  ;;  %2606 = vmatpush.msra.mxu1 %v1787_v2  ;;  %2607 = vmatpush.msra.mxu2 %v1787_v2 }
 0x216   : > { %v3961_v25 = vsel %vm1655_vm4, %v1643_v5, %v1084_v40  ;;  %v1082_v27 = vpop.permute.xlu0 %1081  ;;  %2608 = vmatpush.msra.mxu3 %v1787_v2 }
 0x217   : > { %v3965_v12 = vsel %vm1655_vm4, %v3668_v21, %v1082_v27  ;;  %v1580_v21 = vsel %vm1556_vm1, %v1547_v58, %v3397_v49  ;;  %v2548_v58 = vld [vmem:[%s2820_s5 + $0x152] sm:$0xff] }
 0x218   : > { %v1613_v54 = vsel %vm1589_vm2, %v1580_v21, %v3531_v18  ;;  %v2516_v18 = vld [vmem:[%s2820_s5 + $0x151] sm:$0xff] }
 0x219   : > { %v1646_v10 = vsel %vm1622_vm3, %v1613_v54, %v3611_v48  ;;  %v4919_v48 = vld [vmem:[#allocation78_spill] sm:$0xff]  ;;  %v4921_v54 = vld [vmem:[#allocation84_spill] sm:$0xff] }
 0x21a   : > { %v1550_v5 = vsel %vm1523_vm0, %v4919_v48, %v4918_v60  ;;  %v4920_v21 = vld [vmem:[#allocation30_spill] sm:$0xff]  ;;  %v209_v60 = vld [vmem:[%s2820_s5] sm:$0xff] }
 0x21b   : > { %1437 = vrot.lane.b32.xlu2 %v2529_v9, %s2737_s12  ;;  %1219 = vrot.lane.b32.xlu1 %v4917_v57, %s2736_s11  ;;  %v1583_v40 = vsel %vm1556_vm1, %v1550_v5, %v3409_v4 }
 0x21c   : > { %1207 = vrot.lane.b32.xlu0 %v2478_v34, %s2736_s11 }
 0x21d   : > { %v3985_v13 = vpop.permute.xlu2 %1173  ;;  %v1090_v62 = vpop.permute.xlu1 %1089 }
 0x21e   : > { %v3988_v49 = vsel %vm1655_vm4, %v1646_v10, %v1090_v62  ;;  %v1088_v44 = vpop.permute.xlu0 %1087  ;;  %v1553_v10 = vsel %vm1523_vm0, %v4921_v54, %v4920_v21  ;;  %v210_v21 = vld [vmem:[%s2820_s5 + $0x8] sm:$0xff] }
 0x21f   : > { %v3992_v38 = vsel %vm1655_vm4, %v3689_v23, %v1088_v44  ;;  %v1616_v23 = vsel %vm1589_vm2, %v1583_v40, %v3543_v33  ;;  %v2542_v33 = vld [vmem:[%s2820_s5 + $0x10a] sm:$0xff]  ;;  %v1586_v44 = vsel %vm1556_vm1, %v1553_v10, %v3421_v8  ;;  %v2504_v40 = vld [vmem:[%s2820_s5 + $0xc1] sm:$0xff] }
 0x220   : > { %v1649_v27 = vsel %vm1622_vm3, %v1616_v23, %v3635_v30  ;;  %v4922_v30 = vld [vmem:[#allocation47_spill] sm:$0xff]  ;;  %v4923_v23 = vld [vmem:[#allocation10_spill] sm:$0xff] }
 0x221   : > { %v1552_v62 = vsel %vm1523_vm0, %v4917_v57, %v4922_v30 }
 0x223   : > { %1347 = vrot.lane.b32.xlu2 %v2516_v18, %s2738_s13  ;;  %1335 = vrot.lane.b32.xlu1 %v2510_v52, %s2738_s13  ;;  %v1619_v18 = vsel %vm1589_vm2, %v1586_v44, %v3555_v37  ;;  %v2485_v44 = vld [vmem:[%s2820_s5 + $0x158] sm:$0xff] }
 0x224   : > { %1449 = vrot.lane.b32.xlu0 %v2535_v20, %s2737_s12  ;;  %v1652_v8 = vsel %vm1622_vm3, %v1619_v18, %v3663_v63  ;;  %v1524_v63 = vsel %vm1523_vm0, %v209_v60, %v4923_v23 }
 0x225   : > { %v4009_v2 = vpop.permute.xlu2 %1175  ;;  %v1096_v9 = vpop.permute.xlu1 %1095 }
 0x226   : > { %v4012_v34 = vsel %vm1655_vm4, %v1649_v27, %v1096_v9  ;;  %v1094_v31 = vpop.permute.xlu0 %1093  ;;  %v2472_v27 = vld [vmem:[%s2820_s5 + $0xc0] sm:$0xff] }
 0x227   : > { %v4016_v4 = vsel %vm1655_vm4, %v3726_v14, %v1094_v31  ;;  %v1585_v14 = vsel %vm1556_vm1, %v1552_v62, %v3423_v3  ;;  %v4924_v9 = vld [vmem:[#allocation36_spill] sm:$0xff] }
 0x228   : > { %v1618_v57 = vsel %vm1589_vm2, %v1585_v14, %v3503_v28  ;;  %v2498_v28 = vld [vmem:[%s2820_s5 + $0x79] sm:$0xff]  ;;  %v1557_v31 = vsel %vm1556_vm1, %v1524_v63, %v4924_v9  ;;  %v4925_v14 = vld [vmem:[#allocation13_spill] sm:$0xff] }
 0x229   : > { %v1651_v48 = vsel %vm1622_vm3, %v1618_v57, %v3744_v0  ;;  %v1590_v0 = vsel %vm1589_vm2, %v1557_v31, %v3433_v11  ;;  %v2530_v62 = vld [vmem:[%s2820_s5 + $0x7a] sm:$0xff]  ;;  %v1525_v18 = vsel %vm1523_vm0, %v210_v21, %v4925_v14  ;;  %v2543_v14 = vld [vmem:[%s2820_s5 + $0x112] sm:$0xff] }
 0x22a   : > { %v4926_v57 = vld [vmem:[#allocation59_spill] sm:$0xff]  ;;  %v4929_v21 = vld [vmem:[#allocation92_spill] sm:$0xff] }
 0x22b   : > { %1183 = vrot.lane.b32.xlu2 %v2466_v24, %s2736_s11  ;;  %1475 = vrot.lane.b32.xlu1 %v2548_v58, %s2737_s12  ;;  %v1623_v24 = vsel %vm1622_vm3, %v1590_v0, %v3567_v41  ;;  %v2517_v63 = vld [vmem:[%s2820_s5 + $0x159] sm:$0xff] }
 0x22c   : > { %1463 = vrot.lane.b32.xlu0 %v2542_v33, %s2737_s12  ;;  %v1656_v58 = vsel %vm1655_vm4, %v1623_v24, %v3686_v61  ;;  %v2479_v61 = vld [vmem:[%s2820_s5 + $0x110] sm:$0xff] }
 0x22d   : > { %v4040_v52 = vpop.permute.xlu2 %1315  ;;  %v1102_v20 = vpop.permute.xlu1 %1101  ;;  %v1689_v54 = vsel %vm1688_vm6, %v1656_v58, %v3958_v36  ;;  %v4928_v24 = vld [vmem:[#allocation70_spill] sm:$0xff] }
 0x22e   : > { %v4046_v3 = vsel %vm1655_vm4, %v1652_v8, %v1102_v20  ;;  %v1100_v5 = vpop.permute.xlu0 %1099  ;;  %v1558_v8 = vsel %vm1556_vm1, %v1525_v18, %v4926_v57 }
 0x22f   : > { %v4049_v37 = vsel %vm1655_vm4, %v1651_v48, %v1100_v5  ;;  %v1591_v36 = vsel %vm1589_vm2, %v1558_v8, %v3395_v35 }
 0x230   : > { %v1624_v20 = vsel %vm1622_vm3, %v1591_v36, %v3565_v47  ;;  %v2511_v47 = vld [vmem:[%s2820_s5 + $0x111] sm:$0xff] }
 0x231   : > { %v1657_v60 = vsel %vm1655_vm4, %v1624_v20, %v3809_v1  ;;  %v2658_v1 = vld [vmem:[%s2820_s5 + $0x60] sm:$0xff] }
 0x233   : > { %1323 = vrot.lane.b32.xlu2 %v2504_v40, %s2738_s13  ;;  %1311 = vrot.lane.b32.xlu1 %v2498_v28, %s2738_s13  ;;  %v1690_v40 = vsel %vm1688_vm6, %v1657_v60, %v3985_v13  ;;  %v4927_v13 = vld [vmem:[#allocation7_spill] sm:$0xff] }
 0x234   : > { %1195 = vrot.lane.b32.xlu0 %v2472_v27, %s2736_s11  ;;  %v2536_v27 = vld [vmem:[%s2820_s5 + $0xc2] sm:$0xff]  ;;  %v1532_v9 = vsel %vm1523_vm0, %v2658_v1, %v4927_v13 }
 0x235   : > { %v4067_v33 = vpop.permute.xlu2 %1177  ;;  %v1428_v11 = vpop.permute.xlu1 %1427  ;;  %v1565_v58 = vsel %vm1556_vm1, %v1532_v9, %v4928_v24  ;;  %v2480_v13 = vld [vmem:[%s2820_s5 + $0x120] sm:$0xff] }
 0x236   : > { %v1300_v10 = vpop.permute.xlu0 %1299 }
 0x237   : > { %v1722_v30 = vsel %vm1721_vm7, %v1689_v54, %v1300_v10  ;;  %v1598_v54 = vsel %vm1589_vm2, %v1565_v58, %v4929_v21  ;;  %v4930_v10 = vld [vmem:[#allocation96_spill] sm:$0xff]  ;;  %v2518_v58 = vld [vmem:[%s2820_s5 + $0x169] sm:$0xff] }
 0x238   : > { %v1755_v41 = vsel %vm1754_vm8, %v1722_v30, %v1428_v11  ;;  %v1631_v30 = vsel %vm1622_vm3, %v1598_v54, %v4930_v10  ;;  %v2537_v21 = vld [vmem:[%s2820_s5 + $0xca] sm:$0xff] }
 0x239   : > { %2557 = vmatmul.msk.f32.vlgmr.msra.gmra.mxu0 %vm1796_vm9, %v1755_v41  ;;  %v2467_v41 = vld [vmem:[%s2820_s5 + $0x80] sm:$0xff] }
 0x23b   : > { %1439 = vrot.lane.b32.xlu2 %v2530_v62, %s2737_s12  ;;  %1221 = vrot.lane.b32.xlu1 %v2485_v44, %s2736_s11  ;;  %v2549_v62 = vld [vmem:[%s2820_s5 + $0x15a] sm:$0xff]  ;;  %v1664_v44 = vsel %vm1655_vm4, %v1631_v30, %v3831_v7 }
 0x23c   : > { %1209 = vrot.lane.b32.xlu0 %v2479_v61, %s2736_s11  ;;  %v1691_v61 = vsel %vm1688_vm6, %v3807_v55, %v4009_v2  ;;  %v2505_v55 = vld [vmem:[%s2820_s5 + $0xc9] sm:$0xff]  ;;  %v2499_v2 = vld [vmem:[%s2820_s5 + $0x81] sm:$0xff] }
 0x23d   : > { %v1318_v48 = vpop.permute.xlu2 %1317  ;;  %v1430_v5 = vpop.permute.xlu1 %1429 }
 0x23e   : > { %v1302_v28 = vpop.permute.xlu0 %1301 }
 0x23f   : > { %v1723_v35 = vsel %vm1721_vm7, %v1690_v40, %v1302_v28  ;;  %v2473_v40 = vld [vmem:[%s2820_s5 + $0xc8] sm:$0xff] }
 0x240   : > { %v1756_v23 = vsel %vm1754_vm8, %v1723_v35, %v1430_v5 }
 0x241   : > { %2558 = vmatmul.msk.f32.gmra.mxu0 %vm1796_vm9, %v1756_v23 }
 0x243   : > { %1349 = vrot.lane.b32.xlu2 %v2517_v63, %s2738_s13  ;;  %1337 = vrot.lane.b32.xlu1 %v2511_v47, %s2738_s13  ;;  %v2531_v47 = vld [vmem:[%s2820_s5 + $0x82] sm:$0xff] }
 0x244   : > { %1451 = vrot.lane.b32.xlu0 %v2536_v27, %s2737_s12  ;;  %v2486_v27 = vld [vmem:[%s2820_s5 + $0x168] sm:$0xff] }
 0x245   : > { %v1446_v31 = vpop.permute.xlu2 %1445  ;;  %v1304_v0 = vpop.permute.xlu1 %1303 }
 0x246   : > { %v1188_v11 = vpop.permute.xlu0 %1187  ;;  %v1724_v36 = vsel %vm1721_vm7, %v1691_v61, %v1304_v0 }
 0x247   : > { %v1697_v18 = vsel %vm1688_vm6, %v1664_v44, %v1188_v11  ;;  %v2512_v11 = vld [vmem:[%s2820_s5 + $0x121] sm:$0xff]  ;;  %v2550_v44 = vld [vmem:[%s2820_s5 + $0x16a] sm:$0xff] }
 0x248   : > { %v1730_v7 = vsel %vm1721_vm7, %v1697_v18, %v4040_v52 }
 0x24b   : > { %1185 = vrot.lane.b32.xlu2 %v2467_v41, %s2736_s11  ;;  %1477 = vrot.lane.b32.xlu1 %v2549_v62, %s2737_s12  ;;  %v2474_v62 = vld [vmem:[%s2820_s5 + $0xd8] sm:$0xff] }
 0x24c   : > { %1465 = vrot.lane.b32.xlu0 %v2543_v14, %s2737_s12  ;;  %v2544_v14 = vld [vmem:[%s2820_s5 + $0x122] sm:$0xff] }
 0x24d   : > { %v4123_v57 = vpop.permute.xlu2 %1179  ;;  %v1444_v8 = vpop.permute.xlu1 %1443 }
 0x24e   : > { %v1432_v20 = vpop.permute.xlu0 %1431  ;;  %v1763_v60 = vsel %vm1754_vm8, %v1730_v7, %v1444_v8  ;;  %v2659_v8 = vld [vmem:[%s2820_s5 + $0x30] sm:$0xff]  ;;  %v4931_v7 = vld [vmem:[#allocation5_spill] sm:$0xff] }
 0x24f   : > { %v1757_v5 = vsel %vm1754_vm8, %v1724_v36, %v1432_v20  ;;  %2565 = vmatmul.msk.f32.vlgmr.msra.gmra.mxu1 %vm1796_vm9, %v1763_v60  ;;  %v1528_v36 = vsel %vm1523_vm0, %v2659_v8, %v4931_v7  ;;  %v4932_v60 = vld [vmem:[#allocation65_spill] sm:$0xff]  ;;  %v4938_v8 = vld [vmem:[#allocation95_spill] sm:$0xff] }
 0x250   : > { %2559 = vmatmul.msk.f32.gmra.mxu0 %vm1796_vm9, %v1757_v5  ;;  %v1561_v5 = vsel %vm1556_vm1, %v1528_v36, %v4932_v60 }
 0x253   : > { %1325 = vrot.lane.b32.xlu2 %v2505_v55, %s2738_s13  ;;  %1313 = vrot.lane.b32.xlu1 %v2499_v2, %s2738_s13  ;;  %v2487_v2 = vld [vmem:[%s2820_s5 + $0x170] sm:$0xff] }
 0x254   : > { %1197 = vrot.lane.b32.xlu0 %v2473_v40, %s2736_s11  ;;  %v2481_v40 = vld [vmem:[%s2820_s5 + $0x128] sm:$0xff] }
 0x255   : > { %v1320_v52 = vpop.permute.xlu2 %1319  ;;  %v1306_v28 = vpop.permute.xlu1 %1305 }
 0x256   : > { %v1190_v35 = vpop.permute.xlu0 %1189 }
 0x257   : > { %v1698_v23 = vsel %vm1688_vm6, %v3781_v6, %v1190_v35  ;;  %v1692_v6 = vsel %vm1688_vm6, %v3723_v22, %v4067_v33 }
 0x258   : > { %v1731_v63 = vsel %vm1721_vm7, %v1698_v23, %v1318_v48  ;;  %v1725_v48 = vsel %vm1721_vm7, %v1692_v6, %v1306_v28  ;;  %v4933_v28 = vld [vmem:[#allocation88_spill] sm:$0xff] }
 0x259   : > { %v1764_v1 = vsel %vm1754_vm8, %v1731_v63, %v1446_v31  ;;  %v1594_v35 = vsel %vm1589_vm2, %v1561_v5, %v4933_v28  ;;  %v2506_v63 = vld [vmem:[%s2820_s5 + $0xd9] sm:$0xff] }
 0x25a   : > { %2566 = vmatmul.msk.f32.gmra.mxu1 %vm1796_vm9, %v1764_v1  ;;  %v2488_v28 = vld [vmem:[%s2820_s5 + $0x180] sm:$0xff] }
 0x25b   : > { %1441 = vrot.lane.b32.xlu2 %v2531_v47, %s2737_s12  ;;  %1223 = vrot.lane.b32.xlu1 %v2486_v27, %s2736_s11  ;;  %v4934_v47 = vld [vmem:[#allocation98_spill] sm:$0xff] }
 0x25c   : > { %1211 = vrot.lane.b32.xlu0 %v2480_v13, %s2736_s11  ;;  %v1627_v27 = vsel %vm1622_vm3, %v1594_v35, %v4934_v47  ;;  %v2507_v35 = vld [vmem:[%s2820_s5 + $0xe1] sm:$0xff] }
 0x25d   : > { %v1448_v9 = vpop.permute.xlu2 %1447  ;;  %v1434_v0 = vpop.permute.xlu1 %1433  ;;  %v4939_v47 = vld [vmem:[#allocation8_spill] sm:$0xff] }
 0x25e   : > { %v1204_v24 = vpop.permute.xlu0 %1203  ;;  %v1758_v31 = vsel %vm1754_vm8, %v1725_v48, %v1434_v0  ;;  %v2513_v0 = vld [vmem:[%s2820_s5 + $0x129] sm:$0xff] }
 0x25f   : > { %2560 = vmatmul.msk.f32.gmra.mxu0 %vm1796_vm9, %v1758_v31  ;;  %v1705_v54 = vsel %vm1688_vm6, %v3929_v59, %v1204_v24  ;;  %v2538_v24 = vld [vmem:[%s2820_s5 + $0xda] sm:$0xff] }
 0x263   : > { %1351 = vrot.lane.b32.xlu2 %v2518_v58, %s2738_s13  ;;  %1339 = vrot.lane.b32.xlu1 %v2512_v11, %s2738_s13 }
 0x264   : > { %1453 = vrot.lane.b32.xlu0 %v2537_v21, %s2737_s12 }
 0x265   : > { %v4161_v22 = vpop.permute.xlu2 %1181  ;;  %v1460_v33 = vpop.permute.xlu1 %1459 }
 0x266   : > { %v1332_v10 = vpop.permute.xlu0 %1331 }
 0x267   : > { %v1738_v30 = vsel %vm1721_vm7, %v1705_v54, %v1332_v10  ;;  %v4935_v54 = vld [vmem:[#allocation6_spill] sm:$0xff] }
 0x268   : > { %v1771_v41 = vsel %vm1754_vm8, %v1738_v30, %v1460_v33  ;;  %v2660_v33 = vld [vmem:[%s2820_s5 + $0x38] sm:$0xff] }
 0x269   : > { %2573 = vmatmul.msk.f32.vlgmr.msra.gmra.mxu2 %vm1796_vm9, %v1771_v41  ;;  %v1529_v10 = vsel %vm1523_vm0, %v2660_v33, %v4935_v54  ;;  %v2475_v41 = vld [vmem:[%s2820_s5 + $0xe0] sm:$0xff] }
 0x26b   : > { %1199 = vrot.lane.b32.xlu2 %v2474_v62, %s2736_s11  ;;  %1479 = vrot.lane.b32.xlu1 %v2550_v44, %s2737_s12  ;;  %v2551_v62 = vld [vmem:[%s2820_s5 + $0x172] sm:$0xff]  ;;  %v4936_v44 = vld [vmem:[#allocation64_spill] sm:$0xff] }
 0x26c   : > { %1467 = vrot.lane.b32.xlu0 %v2544_v14, %s2737_s12  ;;  %v1562_v14 = vsel %vm1556_vm1, %v1529_v10, %v4936_v44 }
 0x26d   : > { %v4174_v59 = vpop.permute.xlu2 %1321  ;;  %v1308_v18 = vpop.permute.xlu1 %1307 }
 0x26e   : > { %v1192_v61 = vpop.permute.xlu0 %1191 }
 0x26f   : > { %v1699_v20 = vsel %vm1688_vm6, %v3869_v32, %v1192_v61  ;;  %v1660_v32 = vsel %vm1655_vm4, %v1627_v27, %v3823_v29  ;;  %v2519_v29 = vld [vmem:[%s2820_s5 + $0x171] sm:$0xff] }
 0x270   : > { %v1732_v55 = vsel %vm1721_vm7, %v1699_v20, %v1320_v52  ;;  %v1693_v52 = vsel %vm1688_vm6, %v1660_v32, %v4123_v57 }
 0x271   : > { %v1765_v23 = vsel %vm1754_vm8, %v1732_v55, %v1448_v9  ;;  %v1726_v1 = vsel %vm1721_vm7, %v1693_v52, %v1308_v18  ;;  %v2545_v18 = vld [vmem:[%s2820_s5 + $0x12a] sm:$0xff]  ;;  %v4940_v52 = vld [vmem:[#allocation76_spill] sm:$0xff] }
 0x272   : > { %2567 = vmatmul.msk.f32.gmra.mxu1 %vm1796_vm9, %v1765_v23 }
 0x273   : > { %1225 = vrot.lane.b32.xlu2 %v2487_v2, %s2736_s11  ;;  %1213 = vrot.lane.b32.xlu1 %v2481_v40, %s2736_s11 }
 0x274   : > { %1327 = vrot.lane.b32.xlu0 %v2506_v63, %s2738_s13  ;;  %v2661_v63 = vld [vmem:[%s2820_s5 + $0x80] sm:$0xff] }
 0x275   : > { %v1438_v13 = vpop.permute.xlu2 %1437  ;;  %v1436_v6 = vpop.permute.xlu1 %1435  ;;  %v1535_v27 = vsel %vm1523_vm0, %v2661_v63, %v4939_v47 }
 0x276   : > { %v1206_v48 = vpop.permute.xlu0 %1205  ;;  %v1759_v9 = vsel %vm1754_vm8, %v1726_v1, %v1436_v6  ;;  %v1568_v1 = vsel %vm1556_vm1, %v1535_v27, %v4940_v52 }
 0x277   : > { %2561 = vmatmul.msk.f32.gmra.mxu0 %vm1796_vm9, %v1759_v9  ;;  %v1706_v58 = vsel %vm1688_vm6, %v3925_v46, %v1206_v48  ;;  %v4937_v46 = vld [vmem:[#allocation91_spill] sm:$0xff]  ;;  %v4942_v9 = vld [vmem:[#allocation97_spill] sm:$0xff] }
 0x278   : > { %v1595_v61 = vsel %vm1589_vm2, %v1562_v14, %v4937_v46  ;;  %v2514_v48 = vld [vmem:[%s2820_s5 + $0x139] sm:$0xff] }
 0x279   : > { %v1628_v7 = vsel %vm1622_vm3, %v1595_v61, %v4938_v8 }
 0x27a   : > { %v1661_v36 = vsel %vm1655_vm4, %v1628_v7, %v3817_v53  ;;  %v2482_v53 = vld [vmem:[%s2820_s5 + $0x138] sm:$0xff]  ;;  %v2663_v7 = vld [vmem:[%s2820_s5 + $0x48] sm:$0xff] }
 0x27b   : > { %1353 = vrot.lane.b32.xlu2 %v2519_v29, %s2738_s13  ;;  %1341 = vrot.lane.b32.xlu1 %v2513_v0, %s2738_s13  ;;  %v1694_v20 = vsel %vm1688_vm6, %v1661_v36, %v4161_v22  ;;  %v2539_v0 = vld [vmem:[%s2820_s5 + $0xe2] sm:$0xff] }
 0x27c   : > { %1455 = vrot.lane.b32.xlu0 %v2538_v24, %s2737_s12  ;;  %v4943_v36 = vld [vmem:[#allocation16_spill] sm:$0xff] }
 0x27d   : > { %v4209_v57 = vpop.permute.xlu2 %1347  ;;  %v1462_v31 = vpop.permute.xlu1 %1461 }
 0x27e   : > { %v1334_v11 = vpop.permute.xlu0 %1333 }
 0x27f   : > { %v1739_v21 = vsel %vm1721_vm7, %v1706_v58, %v1334_v11  ;;  %v2662_v58 = vld [vmem:[%s2820_s5 + $0x181] sm:$0xff] }
 0x280   : > { %v1772_v30 = vsel %vm1754_vm8, %v1739_v21, %v1462_v31 }
 0x281   : > { %2574 = vmatmul.msk.f32.gmra.mxu2 %vm1796_vm9, %v1772_v30  ;;  %v2552_v30 = vld [vmem:[%s2820_s5 + $0x182] sm:$0xff] }
 0x283   : > { %1201 = vrot.lane.b32.xlu2 %v2475_v41, %s2736_s11  ;;  %1481 = vrot.lane.b32.xlu1 %v2551_v62, %s2737_s12  ;;  %v2546_v41 = vld [vmem:[%s2820_s5 + $0x13a] sm:$0xff] }
 0x284   : > { %1469 = vrot.lane.b32.xlu0 %v2545_v18, %s2737_s12 }
 0x285   : > { %v4235_v60 = vpop.permute.xlu2 %1183  ;;  %v1310_v5 = vpop.permute.xlu1 %1309 }
 0x286   : > { %v1727_v55 = vsel %vm1721_vm7, %v1694_v20, %v1310_v5  ;;  %v1194_v2 = vpop.permute.xlu0 %1193  ;;  %v2515_v20 = vld [vmem:[%s2820_s5 + $0x141] sm:$0xff]  ;;  %v4944_v5 = vld [vmem:[#allocation46_spill] sm:$0xff] }
 0x287   : > { %v1760_v40 = vsel %vm1754_vm8, %v1727_v55, %v1438_v13  ;;  %v4941_v13 = vld [vmem:[#allocation94_spill] sm:$0xff] }
 0x288   : > { %2562 = vmatmul.msk.f32.gmra.mxu0 %vm1796_vm9, %v1760_v40  ;;  %v1601_v6 = vsel %vm1589_vm2, %v1568_v1, %v4941_v13  ;;  %v2553_v13 = vld [vmem:[%s2820_s5 + $0x18a] sm:$0xff] }
 0x289   : > { %v1634_v29 = vsel %vm1622_vm3, %v1601_v6, %v4942_v9  ;;  %v2665_v6 = vld [vmem:[%s2820_s5 + $0x90] sm:$0xff] }
 0x28a   : > { %v1667_v24 = vsel %vm1655_vm4, %v1634_v29, %v3861_v15  ;;  %v2483_v15 = vld [vmem:[%s2820_s5 + $0x140] sm:$0xff] }
 0x28b   : > { %1227 = vrot.lane.b32.xlu2 %v2488_v28, %s2736_s11  ;;  %1215 = vrot.lane.b32.xlu1 %v2482_v53, %s2736_s11  ;;  %v1700_v31 = vsel %vm1688_vm6, %v1667_v24, %v1194_v2  ;;  %v4945_v2 = vld [vmem:[#allocation90_spill] sm:$0xff]  ;;  %v4946_v28 = vld [vmem:[#allocation100_spill] sm:$0xff] }
 0x28c   : > { %1329 = vrot.lane.b32.xlu0 %v2507_v35, %s2738_s13  ;;  %v1733_v54 = vsel %vm1721_vm7, %v1700_v31, %v4174_v59  ;;  %v2664_v35 = vld [vmem:[%s2820_s5 + $0x189] sm:$0xff] }
 0x28d   : > { %v4246_v22 = vpop.permute.xlu2 %1323  ;;  %v1220_v23 = vpop.permute.xlu1 %1219 }
 0x28e   : > { %v1208_v32 = vpop.permute.xlu0 %1207  ;;  %v1713_v62 = vsel %vm1688_vm6, %v3897_v56, %v1220_v23 }
 0x28f   : > { %v1707_v59 = vsel %vm1688_vm6, %v3835_v43, %v1208_v32  ;;  %v1746_v18 = vsel %vm1721_vm7, %v1713_v62, %v4209_v57  ;;  %v1530_v43 = vsel %vm1523_vm0, %v2663_v7, %v4943_v36  ;;  %v2489_v57 = vld [vmem:[%s2820_s5 + $0x188] sm:$0xff]  ;;  %v4339_v62 = vld [vmem:[%s4721_s2] ss:$0 sm:$0xff] }
 0x290   : > { %v1563_v55 = vsel %vm1556_vm1, %v1530_v43, %v4944_v5 }
 0x291   : > { %v1596_v40 = vsel %vm1589_vm2, %v1563_v55, %v4945_v2 }
 0x292   : > { %v1629_v53 = vsel %vm1622_vm3, %v1596_v40, %v4946_v28 }
 0x293   : > { %1355 = vrot.lane.b32.xlu2 %v2662_v58, %s2738_s13  ;;  %1343 = vrot.lane.b32.xlu1 %v2514_v48, %s2738_s13  ;;  %v1662_v23 = vsel %vm1655_vm4, %v1629_v53, %v3742_v19  ;;  %v2547_v19 = vld [vmem:[%s2820_s5 + $0x142] sm:$0xff]  ;;  %v4947_v48 = vld [vmem:[#allocation22_spill] sm:$0xff] }
 0x294   : > { %1457 = vrot.lane.b32.xlu0 %v2539_v0, %s2737_s12  ;;  %v1695_v63 = vsel %vm1688_vm6, %v1662_v23, %v4235_v60  ;;  %v1536_v9 = vsel %vm1523_vm0, %v2665_v6, %v4947_v48  ;;  %v4948_v0 = vld [vmem:[#allocation57_spill] sm:$0xff]  ;;  %v2666_v53 = vld [vmem:[%s2820_s5 + $0x50] sm:$0xff] }
 0x295   : > { %v1440_v11 = vpop.permute.xlu2 %1439  ;;  %v1336_v21 = vpop.permute.xlu1 %1335  ;;  %v1569_v24 = vsel %vm1556_vm1, %v1536_v9, %v4948_v0  ;;  %v4949_v58 = vld [vmem:[#allocation93_spill] sm:$0xff] }
 0x296   : > { %v1450_v33 = vpop.permute.xlu0 %1449  ;;  %v1740_v56 = vsel %vm1721_vm7, %v1707_v59, %v1336_v21  ;;  %v2522_v21 = vld [vmem:[%s2820_s5 + $0x199] sm:$0xff] }
 0x297   : > { %v1766_v10 = vsel %vm1754_vm8, %v1733_v54, %v1450_v33  ;;  %v2554_v33 = vld [vmem:[%s2820_s5 + $0x19a] sm:$0xff]  ;;  %v4950_v54 = vld [vmem:[#allocation101_spill] sm:$0xff] }
 0x298   : > { %2568 = vmatmul.msk.f32.gmra.mxu1 %vm1796_vm9, %v1766_v10 }
 0x29b   : > { %1217 = vrot.lane.b32.xlu2 %v2483_v15, %s2736_s11  ;;  %1483 = vrot.lane.b32.xlu1 %v2552_v30, %s2737_s12  ;;  %v2490_v15 = vld [vmem:[%s2820_s5 + $0x198] sm:$0xff] }
 0x29c   : > { %1471 = vrot.lane.b32.xlu0 %v2546_v41, %s2737_s12 }
 0x29d   : > { %v4280_v44 = vpop.permute.xlu2 %1349  ;;  %v1476_v14 = vpop.permute.xlu1 %1475 }
 0x29e   : > { %v1464_v46 = vpop.permute.xlu0 %1463  ;;  %v1779_v61 = vsel %vm1754_vm8, %v1746_v18, %v1476_v14 }
 0x29f   : > { %v1773_v8 = vsel %vm1754_vm8, %v1740_v56, %v1464_v46  ;;  %2581 = vmatmul.msk.f32.vlgmr.msra.gmra.mxu3 %vm1796_vm9, %v1779_v61  ;;  %v2491_v61 = vld [vmem:[%s2820_s5 + $0x1a0] sm:$0xff] }
 0x2a0   : > { %2575 = vmatmul.msk.f32.gmra.mxu2 %vm1796_vm9, %v1773_v8  ;;  %v2523_v8 = vld [vmem:[%s2820_s5 + $0x1a1] sm:$0xff] }
 0x2a3   : > { %1357 = vrot.lane.b32.xlu2 %v2664_v35, %s2738_s13  ;;  %1345 = vrot.lane.b32.xlu1 %v2515_v20, %s2738_s13 }
 0x2a4   : > { %1229 = vrot.lane.b32.xlu0 %v2489_v57, %s2736_s11 }
 0x2a5   : > { %v4308_v47 = vpop.permute.xlu2 %1185  ;;  %v1312_v27 = vpop.permute.xlu1 %1311 }
 0x2a6   : > { %v1728_v32 = vsel %vm1721_vm7, %v1695_v63, %v1312_v27  ;;  %v1196_v52 = vpop.permute.xlu0 %1195 }
 0x2a7   : > { %v1761_v1 = vsel %vm1754_vm8, %v1728_v32, %v1440_v11  ;;  %v1602_v11 = vsel %vm1589_vm2, %v1569_v24, %v4949_v58  ;;  %v2555_v32 = vld [vmem:[%s2820_s5 + $0x1a2] sm:$0xff]  ;;  %s2360_s5 = sshll.u32 %s196_s27, 1 }
 0x2a8   : > { %2563 = vmatmul.msk.f32.gmra.mxu0 %vm1796_vm9, %v1761_v1  ;;  %v1635_v10 = vsel %vm1622_vm3, %v1602_v11, %v4950_v54  ;;  %s198_s29 = scalar_lea.vmem [#allocation2], %s2360_s5 }
 0x2a9   : > { %s2269_s30 = sshll.u32 %s198_s29, 4  ;;  %s2270_s30 = int_to_ptr.vmem [resolvable:$true] %s2269_s30 }
 0x2ab   : > { %1103 = vrot.lane.b32.xlu2 %v2552_v30, %s2735_s10  ;;  %1485 = vrot.lane.b32.xlu1 %v2553_v13, %s2737_s12  ;;  %v1668_v30 = vsel %vm1655_vm4, %v1635_v10, %v3804_v42 }
 0x2ac   : > { %1473 = vrot.lane.b32.xlu0 %v2547_v19, %s2737_s12  ;;  %v1701_v41 = vsel %vm1688_vm6, %v1668_v30, %v1196_v52  ;;  %v4953_v52 = vld [vmem:[#allocation89_spill] sm:$0xff] }
 0x2ad   : > { %v1222_v60 = vpop.permute.xlu1 %1221  ;;  %v4323_v31 = vpop.permute.xlu2 %1325  ;;  %v1734_v42 = vsel %vm1721_vm7, %v1701_v41, %v4246_v22 }
 0x2ae   : > { %v1210_v29 = vpop.permute.xlu0 %1209  ;;  %v1714_v22 = vsel %vm1688_vm6, %v4016_v4, %v1222_v60 }
 0x2af   : > { %v1708_v43 = vsel %vm1688_vm6, %v3965_v12, %v1210_v29  ;;  %v1747_v5 = vsel %vm1721_vm7, %v1714_v22, %v4280_v44  ;;  %v4951_v12 = vld [vmem:[#allocation15_spill] sm:$0xff] }
 0x2b0   : > { %v1531_v35 = vsel %vm1523_vm0, %v2666_v53, %v4951_v12  ;;  %v4952_v44 = vld [vmem:[#allocation71_spill] sm:$0xff] }
 0x2b1   : > { %v1564_v23 = vsel %vm1556_vm1, %v1531_v35, %v4952_v44 }
 0x2b2   : > { %v1597_v1 = vsel %vm1589_vm2, %v1564_v23, %v4953_v52 }
 0x2b3   : > { %1359 = vrot.lane.b32.xlu1 %v2522_v21, %s2738_s13  ;;  %1487 = vrot.lane.b32.xlu2 %v2554_v33, %s2737_s12 }
 0x2b4   : > { %1231 = vrot.lane.b32.xlu0 %v2490_v15, %s2736_s11 }
 0x2b5   : > { %v1338_v59 = vpop.permute.xlu1 %1337  ;;  %v1442_v7 = vpop.permute.xlu2 %1441 }
 0x2b6   : > { %v1452_v14 = vpop.permute.xlu0 %1451  ;;  %v1914_v18 = vpop.f32.mrf.mxu0  ;;  %v1741_v55 = vsel %vm1721_vm7, %v1708_v43, %v1338_v59 }
 0x2b7   : > { %v1915_v56 = vadd.f32 %v4339_v62, %v1914_v18  ;;  %v1767_v46 = vsel %vm1754_vm8, %v1734_v42, %v1452_v14 }
 0x2b8   : > { %2569 = vmatmul.msk.f32.gmra.mxu1 %vm1796_vm9, %v1767_v46 }
 0x2b9   : > { %v2010_v36 = vmax.f32 %v1915_v56, 0.0 }
 0x2bb   : > { %2042 = vst.msk [vmem:[%s4351_s28] sm:$0xff] %vm1556_vm1, %v2010_v36  ;;  %1233 = vrot.lane.b32.xlu1 %v2491_v61, %s2736_s11  ;;  %1361 = vrot.lane.b32.xlu2 %v2523_v8, %s2738_s13  ;;  %v2143_v63 = vmul.f32 %v2010_v36, %v2010_v36  ;;  %v2074_v60 = vsel %vm1556_vm1, %v2010_v36, 0.0 }
 0x2bc   : > { %1105 = vrot.lane.b32.xlu0 %v2553_v13, %s2735_s10  ;;  %v4954_v13 = vld [vmem:[#allocation99_spill] sm:$0xff]  ;;  %s2590_s10 = sshll.u32 %s2785_s19, 1  ;;  %s2254_s19 = scalar_lea.sflag [#allocation3], %s196_s27 }
 0x2bd   : > { %v1478_v20 = vpop.permute.xlu1 %1477  ;;  %v1630_v19 = vsel %vm1622_vm3, %v1597_v1, %v4954_v13  ;;  %v1352_v6 = vpop.permute.xlu2 %1351  ;;  %v2175_v58 = vsel %vm1556_vm1, %v2143_v63, 0.0  ;;  %s2267_s13 = scalar_lea.hbm %s4723_s4, %s2590_s10 }
 0x2be   : > { %v1466_v57 = vpop.permute.xlu0 %1465  ;;  %v1917_v4 = vpop.f32.mrf.mxu0  ;;  %v1780_v2 = vsel %vm1754_vm8, %v1747_v5, %v1478_v20  ;;  %v1663_v29 = vsel %vm1655_vm4, %v1630_v19, %v3837_v17  ;;  %s2271_s6 = sshll.u32 %s2267_s13, 4  ;;  %s2272_s6 = int_to_ptr.hbm [resolvable:$true] %s2271_s6 }
 0x2bf   : > { %v1918_v40 = vadd.f32 %v4339_v62, %v1917_v4  ;;  %v1774_v28 = vsel %vm1754_vm8, %v1741_v55, %v1466_v57  ;;  %2582 = vmatmul.msk.f32.gmra.mxu3 %vm1796_vm9, %v1780_v2  ;;  %v1696_v24 = vsel %vm1688_vm6, %v1663_v29, %v4308_v47  ;;  %s2681_s7 = sshra.s32 %s2272_s6, 4  ;;  %s2682_s7 = int_to_ptr.hbm [resolvable:$true] %s2681_s7 }
 0x2c0   : > { %2576 = vmatmul.msk.f32.gmra.mxu2 %vm1796_vm9, %v1774_v28  ;;  %s2683_s8 = scalar_lea.hbm %s2682_s7, 2  ;;  %p2688_p0 = scmp.lt.s32.totalorder %s2682_s7, %s4723_s4 }
 0x2c1   : > { %v2011_v27 = vmax.f32 %v1918_v40, 0.0  ;;  %p2684_p11 = scmp.ne.s32.totalorder %s2682_s7, %s2683_s8  ;;  %p2689_p1 = scmp.lt.s32.totalorder %s2687_s20, %s2683_s8 }
 0x2c3   : > { %2043 = vst.msk [vmem:[%s4351_s28 + $0x8] sm:$0xff] %vm1556_vm1, %v2011_v27  ;;  %v2075_v48 = vsel %vm1556_vm1, %v2011_v27, 0.0  ;;  %v2144_v9 = vmul.f32 %v2011_v27, %v2011_v27  ;;  %p2685_p12 = pnand %p2684_p11, %p2802_p5  ;;  %p2690_p2 = por %p2689_p1, %p2688_p0 }
 0x2c4   : > { %v2076_v0 = vadd.f32 %v2075_v48, %v2074_v60  ;;  %1489 = vrot.lane.b32.xlu0 %v2555_v32, %s2737_s12 }
 0x2c5   : > { %v2176_v11 = vsel %vm1556_vm1, %v2144_v9, 0.0  ;;  %v1314_v21 = vpop.permute.xlu1 %1313  ;;  %v1200_v30 = vpop.permute.xlu2 %1199  ;;  %p2686_p13 = pneg %p2685_p12 }
 0x2c6   : > { %v2177_v33 = vadd.f32 %v2176_v11, %v2175_v58  ;;  %v1729_v54 = vsel %vm1721_vm7, %v1696_v24, %v1314_v21  ;;  %v1198_v10 = vpop.permute.xlu0 %1197  ;;  %v1703_v29 = vsel %vm1688_vm6, %v3900_v26, %v1200_v30 }
 0x2c7   : > { %v1762_v15 = vsel %vm1754_vm8, %v1729_v54, %v1442_v7  ;;  %v1702_v8 = vsel %vm1688_vm6, %v3903_v51, %v1198_v10  ;;  %p2691_p3 = pnand %p2690_p2, %p2686_p13 }
 0x2c8   : > { %2564 = vmatmul.msk.f32.gmra.mxu0 %vm1796_vm9, %v1762_v15  ;;  %v1735_v5 = vsel %vm1721_vm7, %v1702_v8, %v4323_v31 }
 0x2cc   : > { %v1938_v17 = vpop.f32.mrf.mxu1 }
 0x2cd   : > { %v1920_v41 = vpop.f32.mrf.mxu0  ;;  %v1939_v47 = vadd.f32 %v4339_v62, %v1938_v17  ;;  %v1224_v14 = vpop.permute.xlu1 %1223 }
 0x2ce   : > { %v1921_v59 = vadd.f32 %v4339_v62, %v1920_v41  ;;  %v1212_v18 = vpop.permute.xlu0 %1211  ;;  %v1226_v55 = vpop.permute.xlu2 %1225  ;;  %v1715_v51 = vsel %vm1688_vm6, %v4012_v34, %v1224_v14 }
 0x2cf   : > { %v4399_v42 = vmax.f32 %v1939_v47, 0.0  ;;  %v1709_v31 = vsel %vm1688_vm6, %v3961_v25, %v1212_v18  ;;  %v1748_v23 = vsel %vm1721_vm7, %v1715_v51, %v1352_v6  ;;  %v1716_v17 = vsel %vm1688_vm6, %v3922_v16, %v1226_v55 }
 0x2d0   : > { %v2012_v56 = vmax.f32 %v1921_v59, 0.0 }
 0x2d1   : > { %2050 = vst.msk [vmem:[%s4351_s28 + $0x40] sm:$0xff] %vm1556_vm1, %v4399_v42 }
 0x2d2   : > { %2044 = vst.msk [vmem:[%s4351_s28 + $0x10] sm:$0xff] %vm1556_vm1, %v2012_v56  ;;  %v2077_v46 = vsel %vm1556_vm1, %v2012_v56, 0.0  ;;  %v2145_v61 = vmul.f32 %v2012_v56, %v2012_v56 }
 0x2d3   : > { %v2078_v7 = vadd.f32 %v2077_v46, %v2076_v0 }
 0x2d4   : > { %v2178_v36 = vsel %vm1556_vm1, %v2145_v61, 0.0 }
 0x2d5   : > { %v2179_v22 = vadd.f32 %v2178_v36, %v2177_v33  ;;  %v1340_v43 = vpop.permute.xlu1 %1339 }
 0x2d6   : > { %v1454_v20 = vpop.permute.xlu0 %1453  ;;  %v1742_v12 = vsel %vm1721_vm7, %v1709_v31, %v1340_v43  ;;  %v1354_v32 = vpop.permute.xlu2 %1353 }
 0x2d7   : > { %v1941_v57 = vpop.f32.mrf.mxu1  ;;  %v1768_v4 = vsel %vm1754_vm8, %v1735_v5, %v1454_v20  ;;  %v1749_v59 = vsel %vm1721_vm7, %v1716_v17, %v1354_v32 }
 0x2d8   : > { %v1942_v2 = vadd.f32 %v4339_v62, %v1941_v57  ;;  %2570 = vmatmul.msk.f32.gmra.mxu1 %vm1796_vm9, %v1768_v4 }
 0x2da   : > { %v4415_v40 = vmax.f32 %v1942_v2, 0.0 }
 0x2dc   : > { %2051 = vst.msk [vmem:[%s4351_s28 + $0x48] sm:$0xff] %vm1556_vm1, %v4415_v40  ;;  %v1923_v28 = vpop.f32.mrf.mxu0 }
 0x2dd   : > { %v1924_v53 = vadd.f32 %v4339_v62, %v1923_v28  ;;  %v1480_v35 = vpop.permute.xlu1 %1479 }
 0x2de   : > { %v1468_v44 = vpop.permute.xlu0 %1467  ;;  %v1781_v34 = vsel %vm1754_vm8, %v1748_v23, %v1480_v35  ;;  %v1202_v48 = vpop.permute.xlu2 %1201 }
 0x2df   : > { %v2013_v63 = vmax.f32 %v1924_v53, 0.0  ;;  %v1775_v27 = vsel %vm1754_vm8, %v1742_v12, %v1468_v44  ;;  %2583 = vmatmul.msk.f32.gmra.mxu3 %vm1796_vm9, %v1781_v34  ;;  %v1704_v57 = vsel %vm1688_vm6, %v3821_v45, %v1202_v48 }
 0x2e0   : > { %2577 = vmatmul.msk.f32.gmra.mxu2 %vm1796_vm9, %v1775_v27 }
 0x2e1   : > { %2045 = vst.msk [vmem:[%s4351_s28 + $0x18] sm:$0xff] %vm1556_vm1, %v2013_v63  ;;  %v2079_v25 = vsel %vm1556_vm1, %v2013_v63, 0.0  ;;  %v2146_v52 = vmul.f32 %v2013_v63, %v2013_v63 }
 0x2e2   : > { %v2080_v1 = vadd.f32 %v2079_v25, %v2078_v7 }
 0x2e3   : > { %v2180_v13 = vsel %vm1556_vm1, %v2146_v52, 0.0 }
 0x2e4   : > { %v2181_v19 = vadd.f32 %v2180_v13, %v2179_v22 }
 0x2e5   : > { %v1214_v60 = vpop.permute.xlu1 %1213 }
 0x2e6   : > { %v1328_v6 = vpop.permute.xlu0 %1327  ;;  %v1228_v30 = vpop.permute.xlu2 %1227  ;;  %v1710_v41 = vsel %vm1688_vm6, %v3866_v39, %v1214_v60 }
 0x2e7   : > { %v1736_v24 = vsel %vm1721_vm7, %v1703_v29, %v1328_v6  ;;  %v1717_v32 = vsel %vm1688_vm6, %v4049_v37, %v1228_v30 }
 0x2ec   : > { %v1962_v9 = vpop.f32.mrf.mxu2 }
 0x2ed   : > { %v1963_v0 = vadd.f32 %v4339_v62, %v1962_v9  ;;  %v1342_v58 = vpop.permute.xlu1 %1341 }
 0x2ee   : > { %v1456_v11 = vpop.permute.xlu0 %1455  ;;  %v1743_v14 = vsel %vm1721_vm7, %v1710_v41, %v1342_v58  ;;  %v1356_v5 = vpop.permute.xlu2 %1355 }
 0x2ef   : > { %v4439_v21 = vmax.f32 %v1963_v0, 0.0  ;;  %v1944_v33 = vpop.f32.mrf.mxu1  ;;  %v1769_v54 = vsel %vm1754_vm8, %v1736_v24, %v1456_v11 }
 0x2f0   : > { %v1945_v10 = vadd.f32 %v4339_v62, %v1944_v33  ;;  %2571 = vmatmul.msk.f32.gmra.mxu1 %vm1796_vm9, %v1769_v54 }
 0x2f1   : > { %2058 = vst.msk [vmem:[%s4351_s28 + $0x80] sm:$0xff] %vm1556_vm1, %v4439_v21 }
 0x2f2   : > { %v4447_v15 = vmax.f32 %v1945_v10, 0.0 }
 0x2f4   : > { %2052 = vst.msk [vmem:[%s4351_s28 + $0x50] sm:$0xff] %vm1556_vm1, %v4447_v15  ;;  %v1926_v26 = vpop.f32.mrf.mxu0 }
 0x2f5   : > { %v1927_v47 = vadd.f32 %v4339_v62, %v1926_v26  ;;  %v1482_v18 = vpop.permute.xlu1 %1481 }
 0x2f6   : > { %v1470_v56 = vpop.permute.xlu0 %1469  ;;  %v1782_v8 = vsel %vm1754_vm8, %v1749_v59, %v1482_v18  ;;  %v1218_v23 = vpop.permute.xlu2 %1217 }
 0x2f7   : > { %v2014_v46 = vmax.f32 %v1927_v47, 0.0  ;;  %v1776_v61 = vsel %vm1754_vm8, %v1743_v14, %v1470_v56  ;;  %2584 = vmatmul.msk.f32.gmra.mxu3 %vm1796_vm9, %v1782_v8  ;;  %v1712_v11 = vsel %vm1688_vm6, %v3988_v49, %v1218_v23 }
 0x2f8   : > { %2578 = vmatmul.msk.f32.gmra.mxu2 %vm1796_vm9, %v1776_v61 }
 0x2f9   : > { %2046 = vst.msk [vmem:[%s4351_s28 + $0x20] sm:$0xff] %vm1556_vm1, %v2014_v46  ;;  %v2081_v39 = vsel %vm1556_vm1, %v2014_v46, 0.0  ;;  %v2147_v16 = vmul.f32 %v2014_v46, %v2014_v46 }
 0x2fa   : > { %v2082_v7 = vadd.f32 %v2081_v39, %v2080_v1  ;;  %v1750_v1 = vsel %vm1721_vm7, %v1717_v32, %v1356_v5 }
 0x2fb   : > { %v2182_v36 = vsel %vm1556_vm1, %v2147_v16, 0.0 }
 0x2fc   : > { %v2183_v22 = vadd.f32 %v2182_v36, %v2181_v19 }
 0x2fd   : > { %v1216_v43 = vpop.permute.xlu1 %1215 }
 0x2fe   : > { %v1330_v20 = vpop.permute.xlu0 %1329  ;;  %v1711_v25 = vsel %vm1688_vm6, %v3992_v38, %v1216_v43  ;;  %v1358_v37 = vpop.permute.xlu2 %1357 }
 0x2ff   : > { %v1737_v51 = vsel %vm1721_vm7, %v1704_v57, %v1330_v20 }
 0x304   : > { %v1965_v55 = vpop.f32.mrf.mxu2 }
 0x305   : > { %v1966_v4 = vadd.f32 %v4339_v62, %v1965_v55  ;;  %v1929_v2 = vpop.f32.mrf.mxu0  ;;  %v1344_v28 = vpop.permute.xlu1 %1343 }
 0x306   : > { %v1458_v31 = vpop.permute.xlu0 %1457  ;;  %v1930_v53 = vadd.f32 %v4339_v62, %v1929_v2  ;;  %v1744_v13 = vsel %vm1721_vm7, %v1711_v25, %v1344_v28  ;;  %v1104_v33 = vpop.permute.xlu2 %1103  ;;  %v4955_v2 = vld [vmem:[#allocation25_spill] sm:$0xff] }
 0x307   : > { %v4472_v12 = vmax.f32 %v1966_v4, 0.0  ;;  %v1770_v35 = vsel %vm1754_vm8, %v1737_v51, %v1458_v31  ;;  %v1686_v46 = vsel %vm1655_vm4, %v3787_v50, %v1104_v33 }
 0x308   : > { %v2015_v44 = vmax.f32 %v1930_v53, 0.0  ;;  %2572 = vmatmul.msk.f32.gmra.mxu1 %vm1796_vm9, %v1770_v35 }
 0x309   : > { %2059 = vst.msk [vmem:[%s4351_s28 + $0x88] sm:$0xff] %vm1556_vm1, %v4472_v12 }
 0x30a   : > { %2047 = vst.msk [vmem:[%s4351_s28 + $0x28] sm:$0xff] %vm1556_vm1, %v2015_v44  ;;  %v2083_v45 = vsel %vm1556_vm1, %v2015_v44, 0.0  ;;  %v2148_v63 = vmul.f32 %v2015_v44, %v2015_v44 }
 0x30b   : > { %v2084_v27 = vadd.f32 %v2083_v45, %v2082_v7 }
 0x30c   : > { %v2184_v34 = vsel %vm1556_vm1, %v2148_v63, 0.0 }
 0x30d   : > { %v2185_v52 = vadd.f32 %v2184_v34, %v2183_v22  ;;  %v1484_v19 = vpop.permute.xlu1 %1483 }
 0x30e   : > { %v1472_v60 = vpop.permute.xlu0 %1471  ;;  %v1783_v48 = vsel %vm1754_vm8, %v1750_v1, %v1484_v19  ;;  %v1488_v56 = vpop.permute.xlu2 %1487 }
 0x30f   : > { %v1777_v6 = vsel %vm1754_vm8, %v1744_v13, %v1472_v60  ;;  %2585 = vmatmul.msk.f32.gmra.mxu3 %vm1796_vm9, %v1783_v48  ;;  %v2151_v48 = vmul.f32 %v4399_v42, %v4399_v42 }
 0x310   : > { %2579 = vmatmul.msk.f32.gmra.mxu2 %vm1796_vm9, %v1777_v6 }
 0x315   : > { %v1947_v9 = vpop.f32.mrf.mxu1  ;;  %v1346_v29 = vpop.permute.xlu1 %1345 }
 0x316   : > { %v1948_v38 = vadd.f32 %v4339_v62, %v1947_v9  ;;  %v1230_v0 = vpop.permute.xlu0 %1229  ;;  %v1745_v54 = vsel %vm1721_vm7, %v1712_v11, %v1346_v29  ;;  %v1362_v53 = vpop.permute.xlu2 %1361  ;;  %v2089_v29 = vsel %vm1556_vm1, %v4399_v42, 0.0  ;;  %v2093_v42 = vsel %vm1556_vm1, %v4447_v15, 0.0 }
 0x317   : > { %v1718_v58 = vsel %vm1688_vm6, %v4046_v3, %v1230_v0  ;;  %v2152_v0 = vmul.f32 %v4415_v40, %v4415_v40 }
 0x318   : > { %v4494_v24 = vmax.f32 %v1948_v38, 0.0  ;;  %v1751_v17 = vsel %vm1721_vm7, %v1718_v58, %v1358_v37 }
 0x31a   : > { %2053 = vst.msk [vmem:[%s4351_s28 + $0x58] sm:$0xff] %vm1556_vm1, %v4494_v24 }
 0x31d   : > { %v1486_v10 = vpop.permute.xlu1 %1485 }
 0x31e   : > { %v1474_v26 = vpop.permute.xlu0 %1473  ;;  %v1784_v41 = vsel %vm1754_vm8, %v1751_v17, %v1486_v10  ;;  %v2091_v10 = vsel %vm1556_vm1, %v4415_v40, 0.0  ;;  %v2095_v40 = vsel %vm1556_vm1, %v4494_v24, 0.0 }
 0x31f   : > { %v1778_v30 = vsel %vm1754_vm8, %v1745_v54, %v1474_v26  ;;  %2586 = vmatmul.msk.f32.gmra.mxu3 %vm1796_vm9, %v1784_v41  ;;  %v2190_v54 = vsel %vm1556_vm1, %v2151_v48, 0.0  ;;  %v2153_v26 = vmul.f32 %v4447_v15, %v4447_v15  ;;  %v2192_v41 = vsel %vm1556_vm1, %v2152_v0, 0.0 }
 0x320   : > { %2580 = vmatmul.msk.f32.gmra.mxu2 %vm1796_vm9, %v1778_v30 }
 0x322   : > { %v1986_v3 = vpop.f32.mrf.mxu3 }
 0x323   : > { %v1968_v47 = vpop.f32.mrf.mxu2  ;;  %v1987_v49 = vadd.f32 %v4339_v62, %v1986_v3  ;;  %v2154_v3 = vmul.f32 %v4494_v24, %v4494_v24 }
 0x324   : > { %v1969_v59 = vadd.f32 %v4339_v62, %v1968_v47 }
 0x325   : > { %v4511_v14 = vmax.f32 %v1987_v49, 0.0  ;;  %v1932_v18 = vpop.f32.mrf.mxu0  ;;  %v1360_v16 = vpop.permute.xlu1 %1359 }
 0x326   : > { %v4515_v61 = vmax.f32 %v1969_v59, 0.0  ;;  %v1232_v8 = vpop.permute.xlu0 %1231  ;;  %v1933_v39 = vadd.f32 %v4339_v62, %v1932_v18  ;;  %v2194_v59 = vsel %vm1556_vm1, %v2153_v26, 0.0 }
 0x327   : > { %2066 = vst.msk [vmem:[%s4351_s28 + $0xc0] sm:$0xff] %vm1556_vm1, %v4511_v14  ;;  %v1719_v7 = vsel %vm1688_vm6, %v1686_v46, %v1232_v8  ;;  %v2196_v8 = vsel %vm1556_vm1, %v2154_v3, 0.0 }
 0x328   : > { %2060 = vst.msk [vmem:[%s4351_s28 + $0x90] sm:$0xff] %vm1556_vm1, %v4515_v61  ;;  %v2016_v36 = vmax.f32 %v1933_v39, 0.0  ;;  %v1752_v22 = vsel %vm1721_vm7, %v1719_v7, %v1360_v16 }
 0x329   : > { %v1785_v43 = vsel %vm1754_vm8, %v1752_v22, %v1488_v56 }
 0x32a   : > { %2048 = vst.msk [vmem:[%s4351_s28 + $0x30] sm:$0xff] %vm1556_vm1, %v2016_v36  ;;  %v2085_v50 = vsel %vm1556_vm1, %v2016_v36, 0.0  ;;  %v2149_v20 = vmul.f32 %v2016_v36, %v2016_v36  ;;  %2587 = vmatmul.msk.f32.gmra.mxu3 %vm1796_vm9, %v1785_v43 }
 0x32b   : > { %v2086_v5 = vadd.f32 %v2085_v50, %v2084_v27 }
 0x32c   : > { %v2186_v55 = vsel %vm1556_vm1, %v2149_v20, 0.0 }
 0x32d   : > { %v2187_v57 = vadd.f32 %v2186_v55, %v2185_v52  ;;  %v1234_v28 = vpop.permute.xlu1 %1233 }
 0x32e   : > { %v1106_v4 = vpop.permute.xlu0 %1105 }
 0x32f   : > { %v1687_v51 = vsel %vm1655_vm4, %v4955_v2, %v1106_v4 }
 0x330   : > { %v1720_v31 = vsel %vm1688_vm6, %v1687_v51, %v1234_v28 }
 0x331   : > { %v1753_v44 = vsel %vm1721_vm7, %v1720_v31, %v1362_v53 }
 0x335   : > { %v1950_v35 = vpop.f32.mrf.mxu1 }
 0x336   : > { %v1951_v23 = vadd.f32 %v4339_v62, %v1950_v35  ;;  %v1490_v45 = vpop.permute.xlu0 %1489 }
 0x337   : > { %v1786_v63 = vsel %vm1754_vm8, %v1753_v44, %v1490_v45 }
 0x338   : > { %v2022_v27 = vmax.f32 %v1951_v23, 0.0  ;;  %2588 = vmatmul.msk.f32.gmra.mxu3 %vm1796_vm9, %v1786_v63 }
 0x33a   : > { %2054 = vst.msk [vmem:[%s4351_s28 + $0x60] sm:$0xff] %vm1556_vm1, %v2022_v27  ;;  %v2155_v18 = vmul.f32 %v2022_v27, %v2022_v27  ;;  %v2097_v39 = vsel %vm1556_vm1, %v2022_v27, 0.0 }
 0x33c   : > { %v2198_v36 = vsel %vm1556_vm1, %v2155_v18, 0.0 }
 0x342   : > { %v1989_v34 = vpop.f32.mrf.mxu3 }
 0x343   : > { %v1971_v32 = vpop.f32.mrf.mxu2  ;;  %v1990_v25 = vadd.f32 %v4339_v62, %v1989_v34 }
 0x344   : > { %v1972_v52 = vadd.f32 %v4339_v62, %v1971_v32 }
 0x345   : > { %v4543_v1 = vmax.f32 %v1990_v25, 0.0  ;;  %v1935_v13 = vpop.f32.mrf.mxu0 }
 0x346   : > { %v4545_v19 = vmax.f32 %v1972_v52, 0.0  ;;  %v1936_v60 = vadd.f32 %v4339_v62, %v1935_v13 }
 0x347   : > { %2067 = vst.msk [vmem:[%s4351_s28 + $0xc8] sm:$0xff] %vm1556_vm1, %v4543_v1 }
 0x348   : > { %2061 = vst.msk [vmem:[%s4351_s28 + $0x98] sm:$0xff] %vm1556_vm1, %v4545_v19  ;;  %v2017_v6 = vmax.f32 %v1936_v60, 0.0 }
 0x34a   : > { %2049 = vst.msk [vmem:[%s4351_s28 + $0x38] sm:$0xff] %vm1556_vm1, %v2017_v6  ;;  %v2087_v37 = vsel %vm1556_vm1, %v2017_v6, 0.0  ;;  %v2150_v9 = vmul.f32 %v2017_v6, %v2017_v6 }
 0x34b   : > { %v2088_v38 = vadd.f32 %v2087_v37, %v2086_v5 }
 0x34c   : > { %v2188_v58 = vsel %vm1556_vm1, %v2150_v9, 0.0 }
 0x34d   : > { %v2090_v11 = vadd.f32 %v2089_v29, %v2088_v38  ;;  %v2189_v33 = vadd.f32 %v2188_v58, %v2187_v57  ;;  %v2159_v38 = vmul.f32 %v4439_v21, %v4439_v21 }
 0x34f   : > { %v2092_v17 = vadd.f32 %v2091_v10, %v2090_v11  ;;  %v2191_v30 = vadd.f32 %v2190_v54, %v2189_v33  ;;  %v2105_v33 = vsel %vm1556_vm1, %v4439_v21, 0.0  ;;  %v2160_v54 = vmul.f32 %v4472_v12, %v4472_v12 }
 0x350   : > { %v2109_v21 = vsel %vm1556_vm1, %v4515_v61, 0.0 }
 0x351   : > { %v2193_v47 = vadd.f32 %v2192_v41, %v2191_v30  ;;  %v2094_v49 = vadd.f32 %v2093_v42, %v2092_v17  ;;  %v2206_v30 = vsel %vm1556_vm1, %v2159_v38, 0.0  ;;  %v2107_v41 = vsel %vm1556_vm1, %v4472_v12, 0.0 }
 0x352   : > { %v2161_v42 = vmul.f32 %v4515_v61, %v4515_v61  ;;  %v2111_v12 = vsel %vm1556_vm1, %v4545_v19, 0.0 }
 0x353   : > { %v2096_v56 = vadd.f32 %v2095_v40, %v2094_v49  ;;  %v2195_v46 = vadd.f32 %v2194_v59, %v2193_v47  ;;  %v2208_v49 = vsel %vm1556_vm1, %v2160_v54, 0.0  ;;  %v2162_v59 = vmul.f32 %v4545_v19, %v4545_v19 }
 0x355   : > { %v1953_v16 = vpop.f32.mrf.mxu1  ;;  %v2098_v15 = vadd.f32 %v2097_v39, %v2096_v56  ;;  %v2197_v7 = vadd.f32 %v2196_v8, %v2195_v46  ;;  %v2210_v56 = vsel %vm1556_vm1, %v2161_v42, 0.0 }
 0x356   : > { %v1954_v22 = vadd.f32 %v4339_v62, %v1953_v16 }
 0x357   : > { %v2199_v43 = vadd.f32 %v2198_v36, %v2197_v7  ;;  %v2212_v7 = vsel %vm1556_vm1, %v2162_v59, 0.0 }
 0x358   : > { %v2023_v50 = vmax.f32 %v1954_v22, 0.0 }
 0x35a   : > { %2055 = vst.msk [vmem:[%s4351_s28 + $0x68] sm:$0xff] %vm1556_vm1, %v2023_v50  ;;  %v2099_v24 = vsel %vm1556_vm1, %v2023_v50, 0.0  ;;  %v2156_v20 = vmul.f32 %v2023_v50, %v2023_v50 }
 0x35b   : > { %v2100_v5 = vadd.f32 %v2099_v24, %v2098_v15 }
 0x35c   : > { %v2200_v55 = vsel %vm1556_vm1, %v2156_v20, 0.0 }
 0x35d   : > { %v2201_v57 = vadd.f32 %v2200_v55, %v2199_v43 }
 0x362   : > { %v1992_v2 = vpop.f32.mrf.mxu3 }
 0x363   : > { %v1974_v4 = vpop.f32.mrf.mxu2  ;;  %v1993_v28 = vadd.f32 %v4339_v62, %v1992_v2 }
 0x364   : > { %v1975_v51 = vadd.f32 %v4339_v62, %v1974_v4 }
 0x365   : > { %v4587_v53 = vmax.f32 %v1993_v28, 0.0 }
 0x366   : > { %v2030_v31 = vmax.f32 %v1975_v51, 0.0 }
 0x367   : > { %2068 = vst.msk [vmem:[%s4351_s28 + $0xd0] sm:$0xff] %vm1556_vm1, %v4587_v53 }
 0x368   : > { %2062 = vst.msk [vmem:[%s4351_s28 + $0xa0] sm:$0xff] %vm1556_vm1, %v2030_v31  ;;  %v2163_v46 = vmul.f32 %v2030_v31, %v2030_v31  ;;  %v2113_v61 = vsel %vm1556_vm1, %v2030_v31, 0.0 }
 0x36a   : > { %v2214_v24 = vsel %vm1556_vm1, %v2163_v46, 0.0 }
 0x36d   : > { %v1956_v35 = vpop.f32.mrf.mxu1 }
 0x36e   : > { %v1957_v44 = vadd.f32 %v4339_v62, %v1956_v35 }
 0x370   : > { %v2024_v23 = vmax.f32 %v1957_v44, 0.0 }
 0x372   : > { %2056 = vst.msk [vmem:[%s4351_s28 + $0x70] sm:$0xff] %vm1556_vm1, %v2024_v23  ;;  %v2157_v52 = vmul.f32 %v2024_v23, %v2024_v23  ;;  %v2101_v60 = vsel %vm1556_vm1, %v2024_v23, 0.0 }
 0x373   : > { %v2102_v9 = vadd.f32 %v2101_v60, %v2100_v5 }
 0x374   : > { %v2202_v48 = vsel %vm1556_vm1, %v2157_v52, 0.0 }
 0x375   : > { %v2203_v58 = vadd.f32 %v2202_v48, %v2201_v57 }
 0x37a   : > { %v1995_v63 = vpop.f32.mrf.mxu3 }
 0x37b   : > { %v1977_v45 = vpop.f32.mrf.mxu2  ;;  %v1996_v34 = vadd.f32 %v4339_v62, %v1995_v63 }
 0x37c   : > { %v1978_v27 = vadd.f32 %v4339_v62, %v1977_v45 }
 0x37d   : > { %v4599_v25 = vmax.f32 %v1996_v34, 0.0 }
 0x37e   : > { %v2031_v32 = vmax.f32 %v1978_v27, 0.0 }
 0x37f   : > { %2069 = vst.msk [vmem:[%s4351_s28 + $0xd8] sm:$0xff] %vm1556_vm1, %v4599_v25 }
 0x380   : > { %2063 = vst.msk [vmem:[%s4351_s28 + $0xa8] sm:$0xff] %vm1556_vm1, %v2031_v32  ;;  %v2164_v55 = vmul.f32 %v2031_v32, %v2031_v32  ;;  %v2115_v57 = vsel %vm1556_vm1, %v2031_v32, 0.0  ;;  %v2167_v32 = vmul.f32 %v4511_v14, %v4511_v14 }
 0x382   : > { %v2216_v31 = vsel %vm1556_vm1, %v2164_v55, 0.0 }
 0x385   : > { %v1959_v13 = vpop.f32.mrf.mxu1 }
 0x386   : > { %v1960_v6 = vadd.f32 %v4339_v62, %v1959_v13 }
 0x388   : > { %v2025_v37 = vmax.f32 %v1960_v6, 0.0 }
 0x38a   : > { %2057 = vst.msk [vmem:[%s4351_s28 + $0x78] sm:$0xff] %vm1556_vm1, %v2025_v37  ;;  %v2103_v29 = vsel %vm1556_vm1, %v2025_v37, 0.0  ;;  %v2158_v0 = vmul.f32 %v2025_v37, %v2025_v37  ;;  %v2121_v37 = vsel %vm1556_vm1, %v4511_v14, 0.0 }
 0x38b   : > { %v2104_v11 = vadd.f32 %v2103_v29, %v2102_v9  ;;  %v2168_v9 = vmul.f32 %v4543_v1, %v4543_v1 }
 0x38c   : > { %v2204_v10 = vsel %vm1556_vm1, %v2158_v0, 0.0 }
 0x38d   : > { %v2106_v26 = vadd.f32 %v2105_v33, %v2104_v11  ;;  %v2205_v17 = vadd.f32 %v2204_v10, %v2203_v58  ;;  %v2222_v58 = vsel %vm1556_vm1, %v2167_v32, 0.0  ;;  %v2123_v11 = vsel %vm1556_vm1, %v4543_v1, 0.0 }
 0x38e   : > { %v2169_v33 = vmul.f32 %v4587_v53, %v4587_v53  ;;  %v2224_v14 = vsel %vm1556_vm1, %v2168_v9, 0.0  ;;  %v2170_v1 = vmul.f32 %v4599_v25, %v4599_v25 }
 0x38f   : > { %v2108_v3 = vadd.f32 %v2107_v41, %v2106_v26  ;;  %v2207_v47 = vadd.f32 %v2206_v30, %v2205_v17  ;;  %v2125_v17 = vsel %vm1556_vm1, %v4587_v53, 0.0 }
 0x391   : > { %v2110_v40 = vadd.f32 %v2109_v21, %v2108_v3  ;;  %v2209_v18 = vadd.f32 %v2208_v49, %v2207_v47  ;;  %v2226_v3 = vsel %vm1556_vm1, %v2169_v33, 0.0  ;;  %v2127_v21 = vsel %vm1556_vm1, %v4599_v25, 0.0 }
 0x392   : > { %v1998_v15 = vpop.f32.mrf.mxu3 }
 0x393   : > { %v2211_v8 = vadd.f32 %v2210_v56, %v2209_v18  ;;  %v1980_v39 = vpop.f32.mrf.mxu2  ;;  %v2112_v16 = vadd.f32 %v2111_v12, %v2110_v40  ;;  %v1999_v22 = vadd.f32 %v4339_v62, %v1998_v15  ;;  %v2228_v40 = vsel %vm1556_vm1, %v2170_v1, 0.0 }
 0x394   : > { %v1981_v36 = vadd.f32 %v4339_v62, %v1980_v39 }
 0x395   : > { %v2114_v43 = vadd.f32 %v2113_v61, %v2112_v16  ;;  %v2213_v50 = vadd.f32 %v2212_v7, %v2211_v8  ;;  %v2038_v20 = vmax.f32 %v1999_v22, 0.0 }
 0x396   : > { %v2032_v19 = vmax.f32 %v1981_v36, 0.0 }
 0x397   : > { %v2215_v5 = vadd.f32 %v2214_v24, %v2213_v50  ;;  %2070 = vst.msk [vmem:[%s4351_s28 + $0xe0] sm:$0xff] %vm1556_vm1, %v2038_v20  ;;  %v2116_v2 = vadd.f32 %v2115_v57, %v2114_v43  ;;  %v2171_v53 = vmul.f32 %v2038_v20, %v2038_v20  ;;  %v2129_v56 = vsel %vm1556_vm1, %v2038_v20, 0.0 }
 0x398   : > { %2064 = vst.msk [vmem:[%s4351_s28 + $0xb0] sm:$0xff] %vm1556_vm1, %v2032_v19  ;;  %v2165_v4 = vmul.f32 %v2032_v19, %v2032_v19  ;;  %v2117_v35 = vsel %vm1556_vm1, %v2032_v19, 0.0 }
 0x399   : > { %v2217_v45 = vadd.f32 %v2216_v31, %v2215_v5  ;;  %v2118_v52 = vadd.f32 %v2117_v35, %v2116_v2  ;;  %v2230_v46 = vsel %vm1556_vm1, %v2171_v53, 0.0 }
 0x39a   : > { %v2218_v63 = vsel %vm1556_vm1, %v2165_v4, 0.0 }
 0x39b   : > { %v2219_v6 = vadd.f32 %v2218_v63, %v2217_v45 }
 0x3a2   : > { %v2001_v28 = vpop.f32.mrf.mxu3 }
 0x3a3   : > { %v1983_v51 = vpop.f32.mrf.mxu2  ;;  %v2002_v23 = vadd.f32 %v4339_v62, %v2001_v28 }
 0x3a4   : > { %v1984_v44 = vadd.f32 %v4339_v62, %v1983_v51 }
 0x3a5   : > { %v2039_v34 = vmax.f32 %v2002_v23, 0.0 }
 0x3a6   : > { %v2033_v27 = vmax.f32 %v1984_v44, 0.0 }
 0x3a7   : > { %2071 = vst.msk [vmem:[%s4351_s28 + $0xe8] sm:$0xff] %vm1556_vm1, %v2039_v34  ;;  %v2172_v8 = vmul.f32 %v2039_v34, %v2039_v34  ;;  %v2131_v16 = vsel %vm1556_vm1, %v2039_v34, 0.0 }
 0x3a8   : > { %2065 = vst.msk [vmem:[%s4351_s28 + $0xb8] sm:$0xff] %vm1556_vm1, %v2033_v27  ;;  %v2119_v13 = vsel %vm1556_vm1, %v2033_v27, 0.0  ;;  %v2166_v60 = vmul.f32 %v2033_v27, %v2033_v27 }
 0x3a9   : > { %v2120_v48 = vadd.f32 %v2119_v13, %v2118_v52  ;;  %v2232_v25 = vsel %vm1556_vm1, %v2172_v8, 0.0 }
 0x3aa   : > { %v2220_v38 = vsel %vm1556_vm1, %v2166_v60, 0.0 }
 0x3ab   : > { %v2122_v29 = vadd.f32 %v2121_v37, %v2120_v48  ;;  %v2221_v0 = vadd.f32 %v2220_v38, %v2219_v6 }
 0x3ad   : > { %v2124_v54 = vadd.f32 %v2123_v11, %v2122_v29  ;;  %v2223_v10 = vadd.f32 %v2222_v58, %v2221_v0  ;;  %v2004_v26 = vpop.f32.mrf.mxu3 }
 0x3ae   : > { %v2005_v30 = vadd.f32 %v4339_v62, %v2004_v26 }
 0x3af   : > { %v2225_v41 = vadd.f32 %v2224_v14, %v2223_v10  ;;  %v2126_v42 = vadd.f32 %v2125_v17, %v2124_v54 }
 0x3b0   : > { %v2040_v47 = vmax.f32 %v2005_v30, 0.0 }
 0x3b1   : > { %v2227_v49 = vadd.f32 %v2226_v3, %v2225_v41  ;;  %v2128_v59 = vadd.f32 %v2127_v21, %v2126_v42 }
 0x3b2   : > { %2072 = vst.msk [vmem:[%s4351_s28 + $0xf0] sm:$0xff] %vm1556_vm1, %v2040_v47  ;;  %v2173_v61 = vmul.f32 %v2040_v47, %v2040_v47  ;;  %v2133_v43 = vsel %vm1556_vm1, %v2040_v47, 0.0 }
 0x3b3   : > { %v2229_v18 = vadd.f32 %v2228_v40, %v2227_v49  ;;  %v2130_v12 = vadd.f32 %v2129_v56, %v2128_v59 }
 0x3b4   : > { %v2234_v19 = vsel %vm1556_vm1, %v2173_v61, 0.0 }
 0x3b5   : > { %v2231_v39 = vadd.f32 %v2230_v46, %v2229_v18  ;;  %v2132_v15 = vadd.f32 %v2131_v16, %v2130_v12 }
 0x3b7   : > { %v2233_v22 = vadd.f32 %v2232_v25, %v2231_v39  ;;  %v2134_v24 = vadd.f32 %v2133_v43, %v2132_v15 }
 0x3b9   : > { %v2235_v55 = vadd.f32 %v2234_v19, %v2233_v22 }
 0x3bb   : > { %v2007_v7 = vpop.f32.mrf.mxu3 }
 0x3bc   : > { %v2008_v36 = vadd.f32 %v4339_v62, %v2007_v7 }
 0x3be   : > { %v2041_v50 = vmax.f32 %v2008_v36, 0.0 }
 0x3c0   : > { %2073 = vst.msk [vmem:[%s4351_s28 + $0xf8] sm:$0xff] %vm1556_vm1, %v2041_v50  ;;  %v2135_v20 = vsel %vm1556_vm1, %v2041_v50, 0.0  ;;  %v2174_v5 = vmul.f32 %v2041_v50, %v2041_v50 }
 0x3c1   : > { %v2136_v57 = vadd.f32 %v2135_v20, %v2134_v24 }
 0x3c2   : > { %v2236_v4 = vsel %vm1556_vm1, %v2174_v5, 0.0 }
 0x3c3   : > { %v2137_v2 = vrot.slane %v2136_v57, 4  ;;  %v2237_v51 = vadd.f32 %v2236_v4, %v2235_v55 }
 0x3c5   : > { %v2138_v62 = vadd.f32 %v2137_v2, %v2136_v57  ;;  %v2238_v28 = vrot.slane %v2237_v51, 4 }
 0x3c7   : > { %v2139_v31 = vrot.slane %v2138_v62, 2  ;;  %v2239_v35 = vadd.f32 %v2238_v28, %v2237_v51 }
 0x3c9   : > { %v2140_v44 = vadd.f32 %v2139_v31, %v2138_v62  ;;  %v2240_v23 = vrot.slane %v2239_v35, 2 }
 0x3cb   : > { %v2141_v45 = vrot.slane %v2140_v44, 1  ;;  %v2241_v63 = vadd.f32 %v2240_v23, %v2239_v35 }
 0x3cd   : > { %v2242_v27 = vrot.slane %v2241_v63, 1  ;;  %v2142_v34 = vadd.f32 %v2141_v45, %v2140_v44 }
 0x3cf   : > { %v2243_v52 = vadd.f32 %v2242_v27, %v2241_v63 }
 0x3d1   : > { %v2245_v32 = vsel %vm2244_vm10, %v2142_v34, %v2243_v52 }
 0x3d2   : > { %2247 = vst.msk [vmem:[%s198_s29] sm:$0x3] %vm2246_vm11, %v2245_v32 }
 0x3d3   : > { %2694 = shalt.err (!%p2691_p3)
}
 0x3d4   : > { %2610 = dma.vmem_to_hbm [thread:$0]  (%p2802_p5), %s2270_s30, 32, %s2272_s6, %s2254_s19  }
 0x3d5 PF: > { %p2616_p4 = scmp.ge.s32.totalorder %s2729_s18, 2  ;;  %s2291_s28 = sand.u32 1, %s2717_s15  }
 0x3d6   : > { %s2292_s27 = scalar_lea.sflag [#allocation3], %s2291_s28 }
 0x3d7   : > { %p2613_p7 = pnand %p2616_p4, %p2806_p6 }
 0x3d9   : > { %p2614_p8 = pneg %p2613_p7 }
 0x3db   : > { %2712 = dma.done.wait (%p2614_p8), %s2292_s27, 32  }
 0x3dc   : > { %2714 = vsyncadd (%p2614_p8), %s2292_s27, 4294967264  ;;  %p15_p9 = scmp.ge.s32.totalorder %s2789_s21, 4   ;;  %s4956_s15 = smov %s2721_s16 }
 0x3dd   : > { %s4957_s16 = smov %s2725_s17  ;;  %s4958_s17 = smov %s2800_s24 }
 0x3de   : > { %s4959_s18 = smov %s2789_s21  ;;  %17 = sbr.rel (!%p15_p9) target bundleno = 3 (0x3), region = 81 }
 0x3e3   :  { %2298 = vsyncpa [#allocation3], 1 }
 0x3e4   :  { %2300 = vsyncpa [#allocation3 + $0x1], 1 }

</bundles_post_ra>
